<compile_context>
chip_gen: v6e
topology: v6e:2x2x1
jax: 0.10.0
libtpu: 0.0.40
codegen_flags: <defaults>
</compile_context>

<pallas_src>
import functools
import math

import jax
import jax.numpy as jnp
from jax.experimental import pallas as pl
from jax.experimental.pallas import tpu as pltpu

EPS = 1e-5  # PyTorch default eps for LayerNorm / BatchNorm1d


# ----------------------------- traced helpers ---------------------------------

def _norm(x):
    # LayerNorm without affine (gamma/beta are folded into the next linear host-side).
    m = jnp.mean(x, axis=-1, keepdims=True)
    c = x - m
    v = jnp.mean(c * c, axis=-1, keepdims=True)
    return c * jax.lax.rsqrt(v + EPS)


def _silu(x):
    return x * jax.nn.sigmoid(x)


def _ffn_block(x, w1, b1, w2, b2):
    # (LN affine folded into w1/b1; half-step residual 0.5 folded into w2/b2.)
    h = _norm(x)
    h = _silu(jnp.dot(h, w1, preferred_element_type=jnp.float32) + b1)
    h = jnp.dot(h, w2, preferred_element_type=jnp.float32) + b2
    return h + x


# ----------------------------- fused per-batch kernel --------------------------

def _conformer_kernel(*refs, num_heads, kernel_size):
    (x_ref,
     f1_w1, f1_b1, f1_w2, f1_b2,
     wq, bq, wk, bk, wv, bv, wo, bo,
     c_w1a, c_b1a, c_w1b, c_b1b, c_wdw, c_bdw, c_w2, c_b2,
     f2_w1, f2_b1, f2_w2, f2_b2,
     fl_g, fl_b,
     o_ref, ctx_sc) = refs

    x0 = x_ref[0]                                      # (T, D)
    T, D = x0.shape
    hd = D // num_heads

    # ---------------- FFN1 (half-step residual) ----------------
    x1 = _ffn_block(x0, f1_w1[...], f1_b1[...], f1_w2[...], f1_b2[...])

    # ---------------- Self-attention (+ residual) ----------------
    hn = _norm(x1)
    # LN affine and 1/sqrt(hd) already folded into wq/bq (and LN affine into wk/wv).
    q = jnp.dot(hn, wq[...], preferred_element_type=jnp.float32) + bq[...]
    k = jnp.dot(hn, wk[...], preferred_element_type=jnp.float32) + bk[...]
    v = jnp.dot(hn, wv[...], preferred_element_type=jnp.float32) + bv[...]

    for i in range(num_heads):                         # static head loop
        sl = slice(i * hd, (i + 1) * hd)
        qh, kh, vh = q[:, sl], k[:, sl], v[:, sl]
        # Contract last dims of q and k directly (no explicit transpose of K).
        s = jax.lax.dot_general(qh, kh, (((1,), (1,)), ((), ())),
                                preferred_element_type=jnp.float32)   # (T, T)
        s = s - jnp.max(s, axis=-1, keepdims=True)
        e = jnp.exp(s)
        r = pl.reciprocal(jnp.sum(e, axis=-1, keepdims=True), approx=True)
        # Normalize after P@V: scales (T, hd) instead of (T, T).
        ctx_sc[:, sl] = jnp.dot(e, vh, preferred_element_type=jnp.float32) * r

    attn = jnp.dot(ctx_sc[...], wo[...], preferred_element_type=jnp.float32) + bo[...]
    x2 = x1 + attn

    # ---------------- Convolution module (+ residual) ----------------
    hc = _norm(x2)
    # pointwise conv split into the two GLU halves host-side (LN affine folded in)
    a_half = jnp.dot(hc, c_w1a[...], preferred_element_type=jnp.float32) + c_b1a[...]
    g_half = jnp.dot(hc, c_w1b[...], preferred_element_type=jnp.float32) + c_b1b[...]
    hg = a_half * jax.nn.sigmoid(g_half)               # GLU -> (T, C)
    C = hg.shape[1]

    # Depthwise conv along T ('SAME', cross-correlation) with BN(eval) folded in:
    # XLU rolls + one-sided boundary mask per tap (no pad/concatenate).
    pad = (kernel_size - 1) // 2
    wdw = c_wdw[...]                                   # (K, C), BN scale pre-folded
    row = jax.lax.broadcasted_iota(jnp.int32, (T, 1), 0)
    acc = jnp.zeros((T, C), jnp.float32)
    for kk in range(kernel_size):                      # static tap loop
        shift = (pad - kk) % T
        rolled = hg if shift == 0 else pltpu.roll(hg, shift=shift, axis=0)
        if kk < pad:                                   # top boundary only
            rolled = jnp.where(row >= (pad - kk), rolled, 0.0)
        elif kk > pad:                                 # bottom boundary only
            rolled = jnp.where(row < (T + pad - kk), rolled, 0.0)
        acc = acc + rolled * wdw[kk:kk + 1, :]
    acc = _silu(acc + c_bdw[...])                      # folded BN bias, then SiLU

    conv_out = jnp.dot(acc, c_w2[...], preferred_element_type=jnp.float32) + c_b2[...]
    x3 = x2 + conv_out

    # ---------------- FFN2 (half-step residual) + final LayerNorm ----------------
    x4 = _ffn_block(x3, f2_w1[...], f2_b1[...], f2_w2[...], f2_b2[...])
    m = jnp.mean(x4, axis=-1, keepdims=True)
    c = x4 - m
    var = jnp.mean(c * c, axis=-1, keepdims=True)
    o_ref[0] = (c * jax.lax.rsqrt(var + EPS) * fl_g[...] + fl_b[...]).astype(o_ref.dtype)


# ----------------------------- host-side weight prep ---------------------------

def _prep_ffn(f):
    g = f["ln_g"].reshape(-1, 1)                       # (D, 1) LN gamma
    b = f["ln_b"]                                      # (1, D) LN beta
    w1 = f["w1"].T * g                                 # fold LN gamma
    b1 = b @ f["w1"].T + f["b1"]                       # fold LN beta
    w2 = f["w2"].T * 0.5                               # fold half-step residual
    b2 = f["b2"] * 0.5
    return [w1, b1, w2, b2]


def prepare_weights(params, num_heads):
    a = params["attn"]
    c = params["conv"]
    D = a["wq"].shape[0]
    hd = D // num_heads
    scale = 1.0 / math.sqrt(hd)
    C = c["wdw"].shape[1]

    ag = a["ln_g"].reshape(-1, 1)
    ab = a["ln_b"]
    cg = c["ln_g"].reshape(-1, 1)
    cb = c["ln_b"]
    bn_scale = c["bn_g"] * jax.lax.rsqrt(c["bn_rv"] + EPS)        # (1, C)

    flat = []
    flat += _prep_ffn(params["ffn1"])
    flat += [a["wq"].T * ag * scale, (ab @ a["wq"].T + a["bq"]) * scale,  # LN + 1/sqrt(hd)
             a["wk"].T * ag, ab @ a["wk"].T + a["bk"],
             a["wv"].T * ag, ab @ a["wv"].T + a["bv"],
             a["wo"].T, a["bo"]]
    flat += [c["w1"][:C].T * cg, cb @ c["w1"][:C].T + c["b1"][:, :C],     # GLU "a" half
             c["w1"][C:].T * cg, cb @ c["w1"][C:].T + c["b1"][:, C:],     # GLU gate half
             c["wdw"] * bn_scale,                                         # fold BN scale
             (c["bdw"] - c["bn_rm"]) * bn_scale + c["bn_b"],              # fold BN shift
             c["w2"].T, c["b2"]]
    flat += _prep_ffn(params["ffn2"])
    flat += [params["final_ln"]["ln_g"], params["final_ln"]["ln_b"]]
    return flat


# ----------------------------- ConformerLayer forward --------------------------

def conformer_layer(x, params, *, num_heads, kernel_size):
    T, B, D = x.shape
    assert (kernel_size - 1) % 2 == 0, "depthwise_kernel_size must be odd"
    flat = prepare_weights(params, num_heads)

    xb = jnp.transpose(x, (1, 0, 2))                   # (B, T, D): contiguous per-batch tiles

    out = pl.pallas_call(
        functools.partial(_conformer_kernel,
                          num_heads=num_heads, kernel_size=kernel_size),
        out_shape=jax.ShapeDtypeStruct((B, T, D), x.dtype),
        grid=(B,),
        in_specs=[pl.BlockSpec((1, T, D), lambda b: (b, 0, 0))]
                 + [pl.BlockSpec(w.shape, lambda b: (0, 0)) for w in flat],
        out_specs=pl.BlockSpec((1, T, D), lambda b: (b, 0, 0)),
        scratch_shapes=[pltpu.VMEM((T, D), jnp.float32)],        # attention ctx scratch
        compiler_params=pltpu.CompilerParams(dimension_semantics=("parallel",)),
    )(xb, *flat)

    return jnp.transpose(out, (1, 0, 2))               # back to (T, B, D)


# ----------------------------- deterministic parameter init --------------------

def init_params(key, D, ffn_dim, K):
    keys = iter(jax.random.split(key, 32))

    def nrm(shape, scale=0.05):
        return scale * jax.random.normal(next(keys), shape, jnp.float32)

    def ffn_params():
        return dict(
            ln_g=jnp.ones((1, D), jnp.float32), ln_b=jnp.zeros((1, D), jnp.float32),
            w1=nrm((ffn_dim, D)), b1=nrm((1, ffn_dim)),
            w2=nrm((D, ffn_dim)), b2=nrm((1, D)),
        )

    attn = dict(
        ln_g=jnp.ones((1, D), jnp.float32), ln_b=jnp.zeros((1, D), jnp.float32),
        wq=nrm((D, D)), bq=nrm((1, D)),
        wk=nrm((D, D)), bk=nrm((1, D)),
        wv=nrm((D, D)), bv=nrm((1, D)),
        wo=nrm((D, D)), bo=nrm((1, D)),
    )

    C = D  # num_channels == input_dim in ConformerLayer
    conv = dict(
        ln_g=jnp.ones((1, D), jnp.float32), ln_b=jnp.zeros((1, D), jnp.float32),
        w1=nrm((2 * C, D)), b1=nrm((1, 2 * C)),
        wdw=nrm((K, C)), bdw=nrm((1, C)),             # PyTorch (C,1,K) stored as (K,C)
        bn_g=jnp.ones((1, C), jnp.float32), bn_b=jnp.zeros((1, C), jnp.float32),
        bn_rm=nrm((1, C)), bn_rv=1.0 + 0.1 * jnp.abs(nrm((1, C))),
        w2=nrm((D, C)), b2=nrm((1, D)),
    )

    return dict(
        ffn1=ffn_params(),
        attn=attn,
        conv=conv,
        ffn2=ffn_params(),
        final_ln=dict(ln_g=jnp.ones((1, D), jnp.float32),
                      ln_b=jnp.zeros((1, D), jnp.float32)),
    )


if __name__ == "__main__":
    T, B, D = 8, 2, 32        # (seq, batch, input_dim) — seq-first like PyTorch MHA
    FFN_DIM = 64
    NUM_HEADS = 4
    DW_KERNEL = 3             # odd => 'SAME' padding

    key = jax.random.PRNGKey(0)
    kx, kp = jax.random.split(key)
    x = jax.random.normal(kx, (T, B, D), jnp.float32)
    params = init_params(kp, D, FFN_DIM, DW_KERNEL)

    out = conformer_layer(x, params, num_heads=NUM_HEADS, kernel_size=DW_KERNEL)
    out = jax.block_until_ready(out)
    assert out.shape == (T, B, D) and out.dtype == jnp.float32
    print("KERNEL_OK")
</pallas_src>

<mosaic_0001>
module attributes {stable_mosaic.version = 11 : i64} {
  func.func @_conformer_kernel(%arg0: i32, %arg1: memref<1x8x32xf32, #tpu.memory_space<vmem>>, %arg2: memref<32x64xf32, #tpu.memory_space<vmem>>, %arg3: memref<1x64xf32, #tpu.memory_space<vmem>>, %arg4: memref<64x32xf32, #tpu.memory_space<vmem>>, %arg5: memref<1x32xf32, #tpu.memory_space<vmem>>, %arg6: memref<32x32xf32, #tpu.memory_space<vmem>>, %arg7: memref<1x32xf32, #tpu.memory_space<vmem>>, %arg8: memref<32x32xf32, #tpu.memory_space<vmem>>, %arg9: memref<1x32xf32, #tpu.memory_space<vmem>>, %arg10: memref<32x32xf32, #tpu.memory_space<vmem>>, %arg11: memref<1x32xf32, #tpu.memory_space<vmem>>, %arg12: memref<32x32xf32, #tpu.memory_space<vmem>>, %arg13: memref<1x32xf32, #tpu.memory_space<vmem>>, %arg14: memref<32x32xf32, #tpu.memory_space<vmem>>, %arg15: memref<1x32xf32, #tpu.memory_space<vmem>>, %arg16: memref<32x32xf32, #tpu.memory_space<vmem>>, %arg17: memref<1x32xf32, #tpu.memory_space<vmem>>, %arg18: memref<3x32xf32, #tpu.memory_space<vmem>>, %arg19: memref<1x32xf32, #tpu.memory_space<vmem>>, %arg20: memref<32x32xf32, #tpu.memory_space<vmem>>, %arg21: memref<1x32xf32, #tpu.memory_space<vmem>>, %arg22: memref<32x64xf32, #tpu.memory_space<vmem>>, %arg23: memref<1x64xf32, #tpu.memory_space<vmem>>, %arg24: memref<64x32xf32, #tpu.memory_space<vmem>>, %arg25: memref<1x32xf32, #tpu.memory_space<vmem>>, %arg26: memref<1x32xf32, #tpu.memory_space<vmem>>, %arg27: memref<1x32xf32, #tpu.memory_space<vmem>>, %arg28: memref<1x8x32xf32, #tpu.memory_space<vmem>>, %arg29: memref<8x32xf32, #tpu.memory_space<vmem>>) attributes {dimension_semantics = [#tpu.dimension_semantics<parallel>], iteration_bounds = array<i64: 2>, scalar_prefetch = 0 : i64, scratch_operands = 1 : i64, tpu.core_type = #tpu.core_type<tc>, window_params = [{transform_indices = @transform_0, window_bounds = array<i64: 1, 8, 32>}, {pipeline_mode = #tpu.pipeline_mode<synchronous>, transform_indices = @transform_1, window_bounds = array<i64: 32, 64>}, {pipeline_mode = #tpu.pipeline_mode<synchronous>, transform_indices = @transform_2, window_bounds = array<i64: 1, 64>}, {pipeline_mode = #tpu.pipeline_mode<synchronous>, transform_indices = @transform_3, window_bounds = array<i64: 64, 32>}, {pipeline_mode = #tpu.pipeline_mode<synchronous>, transform_indices = @transform_4, window_bounds = array<i64: 1, 32>}, {pipeline_mode = #tpu.pipeline_mode<synchronous>, transform_indices = @transform_5, window_bounds = array<i64: 32, 32>}, {pipeline_mode = #tpu.pipeline_mode<synchronous>, transform_indices = @transform_6, window_bounds = array<i64: 1, 32>}, {pipeline_mode = #tpu.pipeline_mode<synchronous>, transform_indices = @transform_7, window_bounds = array<i64: 32, 32>}, {pipeline_mode = #tpu.pipeline_mode<synchronous>, transform_indices = @transform_8, window_bounds = array<i64: 1, 32>}, {pipeline_mode = #tpu.pipeline_mode<synchronous>, transform_indices = @transform_9, window_bounds = array<i64: 32, 32>}, {pipeline_mode = #tpu.pipeline_mode<synchronous>, transform_indices = @transform_10, window_bounds = array<i64: 1, 32>}, {pipeline_mode = #tpu.pipeline_mode<synchronous>, transform_indices = @transform_11, window_bounds = array<i64: 32, 32>}, {pipeline_mode = #tpu.pipeline_mode<synchronous>, transform_indices = @transform_12, window_bounds = array<i64: 1, 32>}, {pipeline_mode = #tpu.pipeline_mode<synchronous>, transform_indices = @transform_13, window_bounds = array<i64: 32, 32>}, {pipeline_mode = #tpu.pipeline_mode<synchronous>, transform_indices = @transform_14, window_bounds = array<i64: 1, 32>}, {pipeline_mode = #tpu.pipeline_mode<synchronous>, transform_indices = @transform_15, window_bounds = array<i64: 32, 32>}, {pipeline_mode = #tpu.pipeline_mode<synchronous>, transform_indices = @transform_16, window_bounds = array<i64: 1, 32>}, {pipeline_mode = #tpu.pipeline_mode<synchronous>, transform_indices = @transform_17, window_bounds = array<i64: 3, 32>}, {pipeline_mode = #tpu.pipeline_mode<synchronous>, transform_indices = @transform_18, window_bounds = array<i64: 1, 32>}, {pipeline_mode = #tpu.pipeline_mode<synchronous>, transform_indices = @transform_19, window_bounds = array<i64: 32, 32>}, {pipeline_mode = #tpu.pipeline_mode<synchronous>, transform_indices = @transform_20, window_bounds = array<i64: 1, 32>}, {pipeline_mode = #tpu.pipeline_mode<synchronous>, transform_indices = @transform_21, window_bounds = array<i64: 32, 64>}, {pipeline_mode = #tpu.pipeline_mode<synchronous>, transform_indices = @transform_22, window_bounds = array<i64: 1, 64>}, {pipeline_mode = #tpu.pipeline_mode<synchronous>, transform_indices = @transform_23, window_bounds = array<i64: 64, 32>}, {pipeline_mode = #tpu.pipeline_mode<synchronous>, transform_indices = @transform_24, window_bounds = array<i64: 1, 32>}, {pipeline_mode = #tpu.pipeline_mode<synchronous>, transform_indices = @transform_25, window_bounds = array<i64: 1, 32>}, {pipeline_mode = #tpu.pipeline_mode<synchronous>, transform_indices = @transform_26, window_bounds = array<i64: 1, 32>}, {transform_indices = @transform_27, window_bounds = array<i64: 1, 8, 32>}]} {
    %c0 = arith.constant 0 : index
    %c0_0 = arith.constant 0 : index
    %c0_1 = arith.constant 0 : index
    %0 = vector.load %arg1[%c0, %c0_0, %c0_1] : memref<1x8x32xf32, #tpu.memory_space<vmem>>, vector<1x8x32xf32>
    %1 = vector.shape_cast %0 : vector<1x8x32xf32> to vector<8x32xf32>
    %c0_2 = arith.constant 0 : index
    %c0_3 = arith.constant 0 : index
    %2 = vector.load %arg2[%c0_2, %c0_3] : memref<32x64xf32, #tpu.memory_space<vmem>>, vector<32x64xf32>
    %c0_4 = arith.constant 0 : index
    %c0_5 = arith.constant 0 : index
    %3 = vector.load %arg3[%c0_4, %c0_5] : memref<1x64xf32, #tpu.memory_space<vmem>>, vector<1x64xf32>
    %c0_6 = arith.constant 0 : index
    %c0_7 = arith.constant 0 : index
    %4 = vector.load %arg4[%c0_6, %c0_7] : memref<64x32xf32, #tpu.memory_space<vmem>>, vector<64x32xf32>
    %c0_8 = arith.constant 0 : index
    %c0_9 = arith.constant 0 : index
    %5 = vector.load %arg5[%c0_8, %c0_9] : memref<1x32xf32, #tpu.memory_space<vmem>>, vector<1x32xf32>
    %cst = arith.constant dense<0.000000e+00> : vector<8xf32>
    %6 = vector.multi_reduction <add>, %1, %cst [1] : vector<8x32xf32> to vector<8xf32>
    %7 = vector.shape_cast %6 : vector<8xf32> to vector<8x1xf32>
    %cst_10 = arith.constant 3.200000e+01 : f32
    %8 = vector.broadcast %cst_10 : f32 to vector<8x1xf32>
    %9 = arith.divf %7, %8 : vector<8x1xf32>
    %10 = vector.broadcast %9 : vector<8x1xf32> to vector<8x32xf32>
    %11 = arith.subf %1, %10 : vector<8x32xf32>
    %12 = arith.mulf %11, %11 : vector<8x32xf32>
    %cst_11 = arith.constant dense<0.000000e+00> : vector<8xf32>
    %13 = vector.multi_reduction <add>, %12, %cst_11 [1] : vector<8x32xf32> to vector<8xf32>
    %14 = vector.shape_cast %13 : vector<8xf32> to vector<8x1xf32>
    %cst_12 = arith.constant 3.200000e+01 : f32
    %15 = vector.broadcast %cst_12 : f32 to vector<8x1xf32>
    %16 = arith.divf %14, %15 : vector<8x1xf32>
    %cst_13 = arith.constant 9.99999974E-6 : f32
    %17 = vector.broadcast %cst_13 : f32 to vector<8x1xf32>
    %18 = arith.addf %16, %17 : vector<8x1xf32>
    %19 = math.rsqrt %18 : vector<8x1xf32>
    %20 = vector.broadcast %19 : vector<8x1xf32> to vector<8x32xf32>
    %21 = arith.mulf %11, %20 : vector<8x32xf32>
    %cst_14 = arith.constant dense<0.000000e+00> : vector<8x64xf32>
    %22 = tpu.matmul %21, %2, %cst_14 {dimension_numbers = #tpu.dot_dimension_numbers<[1], [0], [0], [1], [0, 0, 1, 1], [], []>} : vector<8x32xf32>, vector<32x64xf32>, vector<8x64xf32> -> vector<8x64xf32>
    %23 = vector.broadcast %3 : vector<1x64xf32> to vector<8x64xf32>
    %24 = arith.addf %22, %23 : vector<8x64xf32>
    %25 = arith.negf %24 : vector<8x64xf32>
    %26 = math.exp %25 : vector<8x64xf32>
    %cst_15 = arith.constant 1.000000e+00 : f32
    %27 = vector.broadcast %cst_15 : f32 to vector<8x64xf32>
    %28 = arith.addf %27, %26 : vector<8x64xf32>
    %29 = arith.divf %27, %28 : vector<8x64xf32>
    %30 = arith.mulf %24, %29 : vector<8x64xf32>
    %cst_16 = arith.constant dense<0.000000e+00> : vector<8x32xf32>
    %31 = tpu.matmul %30, %4, %cst_16 {dimension_numbers = #tpu.dot_dimension_numbers<[1], [0], [0], [1], [0, 0, 1, 1], [], []>} : vector<8x64xf32>, vector<64x32xf32>, vector<8x32xf32> -> vector<8x32xf32>
    %32 = vector.broadcast %5 : vector<1x32xf32> to vector<8x32xf32>
    %33 = arith.addf %31, %32 : vector<8x32xf32>
    %34 = arith.addf %33, %1 : vector<8x32xf32>
    %cst_17 = arith.constant dense<0.000000e+00> : vector<8xf32>
    %35 = vector.multi_reduction <add>, %34, %cst_17 [1] : vector<8x32xf32> to vector<8xf32>
    %36 = vector.shape_cast %35 : vector<8xf32> to vector<8x1xf32>
    %cst_18 = arith.constant 3.200000e+01 : f32
    %37 = vector.broadcast %cst_18 : f32 to vector<8x1xf32>
    %38 = arith.divf %36, %37 : vector<8x1xf32>
    %39 = vector.broadcast %38 : vector<8x1xf32> to vector<8x32xf32>
    %40 = arith.subf %34, %39 : vector<8x32xf32>
    %41 = arith.mulf %40, %40 : vector<8x32xf32>
    %cst_19 = arith.constant dense<0.000000e+00> : vector<8xf32>
    %42 = vector.multi_reduction <add>, %41, %cst_19 [1] : vector<8x32xf32> to vector<8xf32>
    %43 = vector.shape_cast %42 : vector<8xf32> to vector<8x1xf32>
    %cst_20 = arith.constant 3.200000e+01 : f32
    %44 = vector.broadcast %cst_20 : f32 to vector<8x1xf32>
    %45 = arith.divf %43, %44 : vector<8x1xf32>
    %cst_21 = arith.constant 9.99999974E-6 : f32
    %46 = vector.broadcast %cst_21 : f32 to vector<8x1xf32>
    %47 = arith.addf %45, %46 : vector<8x1xf32>
    %48 = math.rsqrt %47 : vector<8x1xf32>
    %49 = vector.broadcast %48 : vector<8x1xf32> to vector<8x32xf32>
    %50 = arith.mulf %40, %49 : vector<8x32xf32>
    %c0_22 = arith.constant 0 : index
    %c0_23 = arith.constant 0 : index
    %51 = vector.load %arg6[%c0_22, %c0_23] : memref<32x32xf32, #tpu.memory_space<vmem>>, vector<32x32xf32>
    %cst_24 = arith.constant dense<0.000000e+00> : vector<8x32xf32>
    %52 = tpu.matmul %50, %51, %cst_24 {dimension_numbers = #tpu.dot_dimension_numbers<[1], [0], [0], [1], [0, 0, 1, 1], [], []>} : vector<8x32xf32>, vector<32x32xf32>, vector<8x32xf32> -> vector<8x32xf32>
    %c0_25 = arith.constant 0 : index
    %c0_26 = arith.constant 0 : index
    %53 = vector.load %arg7[%c0_25, %c0_26] : memref<1x32xf32, #tpu.memory_space<vmem>>, vector<1x32xf32>
    %54 = vector.broadcast %53 : vector<1x32xf32> to vector<8x32xf32>
    %55 = arith.addf %52, %54 : vector<8x32xf32>
    %c0_27 = arith.constant 0 : index
    %c0_28 = arith.constant 0 : index
    %56 = vector.load %arg8[%c0_27, %c0_28] : memref<32x32xf32, #tpu.memory_space<vmem>>, vector<32x32xf32>
    %cst_29 = arith.constant dense<0.000000e+00> : vector<8x32xf32>
    %57 = tpu.matmul %50, %56, %cst_29 {dimension_numbers = #tpu.dot_dimension_numbers<[1], [0], [0], [1], [0, 0, 1, 1], [], []>} : vector<8x32xf32>, vector<32x32xf32>, vector<8x32xf32> -> vector<8x32xf32>
    %c0_30 = arith.constant 0 : index
    %c0_31 = arith.constant 0 : index
    %58 = vector.load %arg9[%c0_30, %c0_31] : memref<1x32xf32, #tpu.memory_space<vmem>>, vector<1x32xf32>
    %59 = vector.broadcast %58 : vector<1x32xf32> to vector<8x32xf32>
    %60 = arith.addf %57, %59 : vector<8x32xf32>
    %c0_32 = arith.constant 0 : index
    %c0_33 = arith.constant 0 : index
    %61 = vector.load %arg10[%c0_32, %c0_33] : memref<32x32xf32, #tpu.memory_space<vmem>>, vector<32x32xf32>
    %cst_34 = arith.constant dense<0.000000e+00> : vector<8x32xf32>
    %62 = tpu.matmul %50, %61, %cst_34 {dimension_numbers = #tpu.dot_dimension_numbers<[1], [0], [0], [1], [0, 0, 1, 1], [], []>} : vector<8x32xf32>, vector<32x32xf32>, vector<8x32xf32> -> vector<8x32xf32>
    %c0_35 = arith.constant 0 : index
    %c0_36 = arith.constant 0 : index
    %63 = vector.load %arg11[%c0_35, %c0_36] : memref<1x32xf32, #tpu.memory_space<vmem>>, vector<1x32xf32>
    %64 = vector.broadcast %63 : vector<1x32xf32> to vector<8x32xf32>
    %65 = arith.addf %62, %64 : vector<8x32xf32>
    %66 = vector.extract_strided_slice %55 {offsets = [0, 0], sizes = [8, 8], strides = [1, 1]} : vector<8x32xf32> to vector<8x8xf32>
    %67 = vector.extract_strided_slice %60 {offsets = [0, 0], sizes = [8, 8], strides = [1, 1]} : vector<8x32xf32> to vector<8x8xf32>
    %68 = vector.extract_strided_slice %65 {offsets = [0, 0], sizes = [8, 8], strides = [1, 1]} : vector<8x32xf32> to vector<8x8xf32>
    %cst_37 = arith.constant dense<0.000000e+00> : vector<8x8xf32>
    %69 = tpu.matmul %66, %67, %cst_37 {dimension_numbers = #tpu.dot_dimension_numbers<[1], [1], [0], [0], [0, 0, 1, 0], [], []>} : vector<8x8xf32>, vector<8x8xf32>, vector<8x8xf32> -> vector<8x8xf32>
    %cst_38 = arith.constant dense<0xFF800000> : vector<8xf32>
    %70 = vector.multi_reduction <maximumf>, %69, %cst_38 [1] : vector<8x8xf32> to vector<8xf32>
    %71 = vector.shape_cast %70 : vector<8xf32> to vector<8x1xf32>
    %72 = vector.broadcast %71 : vector<8x1xf32> to vector<8x8xf32>
    %73 = arith.subf %69, %72 : vector<8x8xf32>
    %74 = math.exp %73 : vector<8x8xf32>
    %cst_39 = arith.constant dense<0.000000e+00> : vector<8xf32>
    %75 = vector.multi_reduction <add>, %74, %cst_39 [1] : vector<8x8xf32> to vector<8xf32>
    %76 = vector.shape_cast %75 : vector<8xf32> to vector<8x1xf32>
    %77 = tpu.reciprocal %76 {approx = true} : vector<8x1xf32> -> vector<8x1xf32>
    %cst_40 = arith.constant dense<0.000000e+00> : vector<8x8xf32>
    %78 = tpu.matmul %74, %68, %cst_40 {dimension_numbers = #tpu.dot_dimension_numbers<[1], [0], [0], [1], [0, 0, 1, 1], [], []>} : vector<8x8xf32>, vector<8x8xf32>, vector<8x8xf32> -> vector<8x8xf32>
    %79 = vector.broadcast %77 : vector<8x1xf32> to vector<8x8xf32>
    %80 = arith.mulf %78, %79 : vector<8x8xf32>
    %c0_41 = arith.constant 0 : index
    %c0_42 = arith.constant 0 : index
    %81 = vector.load %arg29[%c0_41, %c0_42] : memref<8x32xf32, #tpu.memory_space<vmem>>, vector<8x8xf32>
    tpu.vector_store %arg29[%c0_41, %c0_42], %80 {strides = array<i32>} : memref<8x32xf32, #tpu.memory_space<vmem>>, vector<8x8xf32>,
    %82 = vector.extract_strided_slice %55 {offsets = [0, 8], sizes = [8, 8], strides = [1, 1]} : vector<8x32xf32> to vector<8x8xf32>
    %83 = vector.extract_strided_slice %60 {offsets = [0, 8], sizes = [8, 8], strides = [1, 1]} : vector<8x32xf32> to vector<8x8xf32>
    %84 = vector.extract_strided_slice %65 {offsets = [0, 8], sizes = [8, 8], strides = [1, 1]} : vector<8x32xf32> to vector<8x8xf32>
    %cst_43 = arith.constant dense<0.000000e+00> : vector<8x8xf32>
    %85 = tpu.matmul %82, %83, %cst_43 {dimension_numbers = #tpu.dot_dimension_numbers<[1], [1], [0], [0], [0, 0, 1, 0], [], []>} : vector<8x8xf32>, vector<8x8xf32>, vector<8x8xf32> -> vector<8x8xf32>
    %cst_44 = arith.constant dense<0xFF800000> : vector<8xf32>
    %86 = vector.multi_reduction <maximumf>, %85, %cst_44 [1] : vector<8x8xf32> to vector<8xf32>
    %87 = vector.shape_cast %86 : vector<8xf32> to vector<8x1xf32>
    %88 = vector.broadcast %87 : vector<8x1xf32> to vector<8x8xf32>
    %89 = arith.subf %85, %88 : vector<8x8xf32>
    %90 = math.exp %89 : vector<8x8xf32>
    %cst_45 = arith.constant dense<0.000000e+00> : vector<8xf32>
    %91 = vector.multi_reduction <add>, %90, %cst_45 [1] : vector<8x8xf32> to vector<8xf32>
    %92 = vector.shape_cast %91 : vector<8xf32> to vector<8x1xf32>
    %93 = tpu.reciprocal %92 {approx = true} : vector<8x1xf32> -> vector<8x1xf32>
    %cst_46 = arith.constant dense<0.000000e+00> : vector<8x8xf32>
    %94 = tpu.matmul %90, %84, %cst_46 {dimension_numbers = #tpu.dot_dimension_numbers<[1], [0], [0], [1], [0, 0, 1, 1], [], []>} : vector<8x8xf32>, vector<8x8xf32>, vector<8x8xf32> -> vector<8x8xf32>
    %95 = vector.broadcast %93 : vector<8x1xf32> to vector<8x8xf32>
    %96 = arith.mulf %94, %95 : vector<8x8xf32>
    %c0_47 = arith.constant 0 : index
    %c8 = arith.constant 8 : index
    %97 = vector.load %arg29[%c0_47, %c8] : memref<8x32xf32, #tpu.memory_space<vmem>>, vector<8x8xf32>
    tpu.vector_store %arg29[%c0_47, %c8], %96 {strides = array<i32>} : memref<8x32xf32, #tpu.memory_space<vmem>>, vector<8x8xf32>,
    %98 = vector.extract_strided_slice %55 {offsets = [0, 16], sizes = [8, 8], strides = [1, 1]} : vector<8x32xf32> to vector<8x8xf32>
    %99 = vector.extract_strided_slice %60 {offsets = [0, 16], sizes = [8, 8], strides = [1, 1]} : vector<8x32xf32> to vector<8x8xf32>
    %100 = vector.extract_strided_slice %65 {offsets = [0, 16], sizes = [8, 8], strides = [1, 1]} : vector<8x32xf32> to vector<8x8xf32>
    %cst_48 = arith.constant dense<0.000000e+00> : vector<8x8xf32>
    %101 = tpu.matmul %98, %99, %cst_48 {dimension_numbers = #tpu.dot_dimension_numbers<[1], [1], [0], [0], [0, 0, 1, 0], [], []>} : vector<8x8xf32>, vector<8x8xf32>, vector<8x8xf32> -> vector<8x8xf32>
    %cst_49 = arith.constant dense<0xFF800000> : vector<8xf32>
    %102 = vector.multi_reduction <maximumf>, %101, %cst_49 [1] : vector<8x8xf32> to vector<8xf32>
    %103 = vector.shape_cast %102 : vector<8xf32> to vector<8x1xf32>
    %104 = vector.broadcast %103 : vector<8x1xf32> to vector<8x8xf32>
    %105 = arith.subf %101, %104 : vector<8x8xf32>
    %106 = math.exp %105 : vector<8x8xf32>
    %cst_50 = arith.constant dense<0.000000e+00> : vector<8xf32>
    %107 = vector.multi_reduction <add>, %106, %cst_50 [1] : vector<8x8xf32> to vector<8xf32>
    %108 = vector.shape_cast %107 : vector<8xf32> to vector<8x1xf32>
    %109 = tpu.reciprocal %108 {approx = true} : vector<8x1xf32> -> vector<8x1xf32>
    %cst_51 = arith.constant dense<0.000000e+00> : vector<8x8xf32>
    %110 = tpu.matmul %106, %100, %cst_51 {dimension_numbers = #tpu.dot_dimension_numbers<[1], [0], [0], [1], [0, 0, 1, 1], [], []>} : vector<8x8xf32>, vector<8x8xf32>, vector<8x8xf32> -> vector<8x8xf32>
    %111 = vector.broadcast %109 : vector<8x1xf32> to vector<8x8xf32>
    %112 = arith.mulf %110, %111 : vector<8x8xf32>
    %c0_52 = arith.constant 0 : index
    %c16 = arith.constant 16 : index
    %113 = vector.load %arg29[%c0_52, %c16] : memref<8x32xf32, #tpu.memory_space<vmem>>, vector<8x8xf32>
    tpu.vector_store %arg29[%c0_52, %c16], %112 {strides = array<i32>} : memref<8x32xf32, #tpu.memory_space<vmem>>, vector<8x8xf32>,
    %114 = vector.extract_strided_slice %55 {offsets = [0, 24], sizes = [8, 8], strides = [1, 1]} : vector<8x32xf32> to vector<8x8xf32>
    %115 = vector.extract_strided_slice %60 {offsets = [0, 24], sizes = [8, 8], strides = [1, 1]} : vector<8x32xf32> to vector<8x8xf32>
    %116 = vector.extract_strided_slice %65 {offsets = [0, 24], sizes = [8, 8], strides = [1, 1]} : vector<8x32xf32> to vector<8x8xf32>
    %cst_53 = arith.constant dense<0.000000e+00> : vector<8x8xf32>
    %117 = tpu.matmul %114, %115, %cst_53 {dimension_numbers = #tpu.dot_dimension_numbers<[1], [1], [0], [0], [0, 0, 1, 0], [], []>} : vector<8x8xf32>, vector<8x8xf32>, vector<8x8xf32> -> vector<8x8xf32>
    %cst_54 = arith.constant dense<0xFF800000> : vector<8xf32>
    %118 = vector.multi_reduction <maximumf>, %117, %cst_54 [1] : vector<8x8xf32> to vector<8xf32>
    %119 = vector.shape_cast %118 : vector<8xf32> to vector<8x1xf32>
    %120 = vector.broadcast %119 : vector<8x1xf32> to vector<8x8xf32>
    %121 = arith.subf %117, %120 : vector<8x8xf32>
    %122 = math.exp %121 : vector<8x8xf32>
    %cst_55 = arith.constant dense<0.000000e+00> : vector<8xf32>
    %123 = vector.multi_reduction <add>, %122, %cst_55 [1] : vector<8x8xf32> to vector<8xf32>
    %124 = vector.shape_cast %123 : vector<8xf32> to vector<8x1xf32>
    %125 = tpu.reciprocal %124 {approx = true} : vector<8x1xf32> -> vector<8x1xf32>
    %cst_56 = arith.constant dense<0.000000e+00> : vector<8x8xf32>
    %126 = tpu.matmul %122, %116, %cst_56 {dimension_numbers = #tpu.dot_dimension_numbers<[1], [0], [0], [1], [0, 0, 1, 1], [], []>} : vector<8x8xf32>, vector<8x8xf32>, vector<8x8xf32> -> vector<8x8xf32>
    %127 = vector.broadcast %125 : vector<8x1xf32> to vector<8x8xf32>
    %128 = arith.mulf %126, %127 : vector<8x8xf32>
    %c0_57 = arith.constant 0 : index
    %c24 = arith.constant 24 : index
    %129 = vector.load %arg29[%c0_57, %c24] : memref<8x32xf32, #tpu.memory_space<vmem>>, vector<8x8xf32>
    tpu.vector_store %arg29[%c0_57, %c24], %128 {strides = array<i32>} : memref<8x32xf32, #tpu.memory_space<vmem>>, vector<8x8xf32>,
    %c0_58 = arith.constant 0 : index
    %c0_59 = arith.constant 0 : index
    %130 = vector.load %arg29[%c0_58, %c0_59] : memref<8x32xf32, #tpu.memory_space<vmem>>, vector<8x32xf32>
    %c0_60 = arith.constant 0 : index
    %c0_61 = arith.constant 0 : index
    %131 = vector.load %arg12[%c0_60, %c0_61] : memref<32x32xf32, #tpu.memory_space<vmem>>, vector<32x32xf32>
    %cst_62 = arith.constant dense<0.000000e+00> : vector<8x32xf32>
    %132 = tpu.matmul %130, %131, %cst_62 {dimension_numbers = #tpu.dot_dimension_numbers<[1], [0], [0], [1], [0, 0, 1, 1], [], []>} : vector<8x32xf32>, vector<32x32xf32>, vector<8x32xf32> -> vector<8x32xf32>
    %c0_63 = arith.constant 0 : index
    %c0_64 = arith.constant 0 : index
    %133 = vector.load %arg13[%c0_63, %c0_64] : memref<1x32xf32, #tpu.memory_space<vmem>>, vector<1x32xf32>
    %134 = vector.broadcast %133 : vector<1x32xf32> to vector<8x32xf32>
    %135 = arith.addf %132, %134 : vector<8x32xf32>
    %136 = arith.addf %34, %135 : vector<8x32xf32>
    %cst_65 = arith.constant dense<0.000000e+00> : vector<8xf32>
    %137 = vector.multi_reduction <add>, %136, %cst_65 [1] : vector<8x32xf32> to vector<8xf32>
    %138 = vector.shape_cast %137 : vector<8xf32> to vector<8x1xf32>
    %cst_66 = arith.constant 3.200000e+01 : f32
    %139 = vector.broadcast %cst_66 : f32 to vector<8x1xf32>
    %140 = arith.divf %138, %139 : vector<8x1xf32>
    %141 = vector.broadcast %140 : vector<8x1xf32> to vector<8x32xf32>
    %142 = arith.subf %136, %141 : vector<8x32xf32>
    %143 = arith.mulf %142, %142 : vector<8x32xf32>
    %cst_67 = arith.constant dense<0.000000e+00> : vector<8xf32>
    %144 = vector.multi_reduction <add>, %143, %cst_67 [1] : vector<8x32xf32> to vector<8xf32>
    %145 = vector.shape_cast %144 : vector<8xf32> to vector<8x1xf32>
    %cst_68 = arith.constant 3.200000e+01 : f32
    %146 = vector.broadcast %cst_68 : f32 to vector<8x1xf32>
    %147 = arith.divf %145, %146 : vector<8x1xf32>
    %cst_69 = arith.constant 9.99999974E-6 : f32
    %148 = vector.broadcast %cst_69 : f32 to vector<8x1xf32>
    %149 = arith.addf %147, %148 : vector<8x1xf32>
    %150 = math.rsqrt %149 : vector<8x1xf32>
    %151 = vector.broadcast %150 : vector<8x1xf32> to vector<8x32xf32>
    %152 = arith.mulf %142, %151 : vector<8x32xf32>
    %c0_70 = arith.constant 0 : index
    %c0_71 = arith.constant 0 : index
    %153 = vector.load %arg14[%c0_70, %c0_71] : memref<32x32xf32, #tpu.memory_space<vmem>>, vector<32x32xf32>
    %cst_72 = arith.constant dense<0.000000e+00> : vector<8x32xf32>
    %154 = tpu.matmul %152, %153, %cst_72 {dimension_numbers = #tpu.dot_dimension_numbers<[1], [0], [0], [1], [0, 0, 1, 1], [], []>} : vector<8x32xf32>, vector<32x32xf32>, vector<8x32xf32> -> vector<8x32xf32>
    %c0_73 = arith.constant 0 : index
    %c0_74 = arith.constant 0 : index
    %155 = vector.load %arg15[%c0_73, %c0_74] : memref<1x32xf32, #tpu.memory_space<vmem>>, vector<1x32xf32>
    %156 = vector.broadcast %155 : vector<1x32xf32> to vector<8x32xf32>
    %157 = arith.addf %154, %156 : vector<8x32xf32>
    %c0_75 = arith.constant 0 : index
    %c0_76 = arith.constant 0 : index
    %158 = vector.load %arg16[%c0_75, %c0_76] : memref<32x32xf32, #tpu.memory_space<vmem>>, vector<32x32xf32>
    %cst_77 = arith.constant dense<0.000000e+00> : vector<8x32xf32>
    %159 = tpu.matmul %152, %158, %cst_77 {dimension_numbers = #tpu.dot_dimension_numbers<[1], [0], [0], [1], [0, 0, 1, 1], [], []>} : vector<8x32xf32>, vector<32x32xf32>, vector<8x32xf32> -> vector<8x32xf32>
    %c0_78 = arith.constant 0 : index
    %c0_79 = arith.constant 0 : index
    %160 = vector.load %arg17[%c0_78, %c0_79] : memref<1x32xf32, #tpu.memory_space<vmem>>, vector<1x32xf32>
    %161 = vector.broadcast %160 : vector<1x32xf32> to vector<8x32xf32>
    %162 = arith.addf %159, %161 : vector<8x32xf32>
    %163 = arith.negf %162 : vector<8x32xf32>
    %164 = math.exp %163 : vector<8x32xf32>
    %cst_80 = arith.constant 1.000000e+00 : f32
    %165 = vector.broadcast %cst_80 : f32 to vector<8x32xf32>
    %166 = arith.addf %165, %164 : vector<8x32xf32>
    %167 = arith.divf %165, %166 : vector<8x32xf32>
    %168 = arith.mulf %157, %167 : vector<8x32xf32>
    %c0_81 = arith.constant 0 : index
    %c0_82 = arith.constant 0 : index
    %169 = vector.load %arg18[%c0_81, %c0_82] : memref<3x32xf32, #tpu.memory_space<vmem>>, vector<3x32xf32>
    %170 = tpu.iota {dimensions = array<i32: 0>} : vector<8x1xi32>
    %cst_83 = arith.constant 0.000000e+00 : f32
    %171 = vector.broadcast %cst_83 : f32 to vector<8x32xf32>
    %c1_i32 = arith.constant 1 : i32
    %172 = tpu.dynamic_rotate %168 by %c1_i32 dim 0 : vector<8x32xf32>, i32 -> vector<8x32xf32>
    %c1_i32_84 = arith.constant 1 : i32
    %173 = vector.broadcast %c1_i32_84 : i32 to vector<8x1xi32>
    %174 = arith.cmpi sge, %170, %173 : vector<8x1xi32>
    %cst_85 = arith.constant 0.000000e+00 : f32
    %175 = vector.shape_cast %174 : vector<8x1xi1> to vector<8x1xi1>
    %176 = vector.broadcast %175 : vector<8x1xi1> to vector<8x32xi1>
    %177 = vector.broadcast %cst_85 : f32 to vector<8x32xf32>
    %178 = arith.select %176, %172, %177 : vector<8x32xi1>, vector<8x32xf32>
    %179 = vector.extract_strided_slice %169 {offsets = [0, 0], sizes = [1, 32], strides = [1, 1]} : vector<3x32xf32> to vector<1x32xf32>
    %180 = vector.broadcast %179 : vector<1x32xf32> to vector<8x32xf32>
    %181 = arith.mulf %178, %180 : vector<8x32xf32>
    %182 = arith.addf %171, %181 : vector<8x32xf32>
    %183 = vector.extract_strided_slice %169 {offsets = [1, 0], sizes = [1, 32], strides = [1, 1]} : vector<3x32xf32> to vector<1x32xf32>
    %184 = vector.broadcast %183 : vector<1x32xf32> to vector<8x32xf32>
    %185 = arith.mulf %168, %184 : vector<8x32xf32>
    %186 = arith.addf %182, %185 : vector<8x32xf32>
    %c7_i32 = arith.constant 7 : i32
    %187 = tpu.dynamic_rotate %168 by %c7_i32 dim 0 : vector<8x32xf32>, i32 -> vector<8x32xf32>
    %c7_i32_86 = arith.constant 7 : i32
    %188 = vector.broadcast %c7_i32_86 : i32 to vector<8x1xi32>
    %189 = arith.cmpi slt, %170, %188 : vector<8x1xi32>
    %cst_87 = arith.constant 0.000000e+00 : f32
    %190 = vector.shape_cast %189 : vector<8x1xi1> to vector<8x1xi1>
    %191 = vector.broadcast %190 : vector<8x1xi1> to vector<8x32xi1>
    %192 = vector.broadcast %cst_87 : f32 to vector<8x32xf32>
    %193 = arith.select %191, %187, %192 : vector<8x32xi1>, vector<8x32xf32>
    %194 = vector.extract_strided_slice %169 {offsets = [2, 0], sizes = [1, 32], strides = [1, 1]} : vector<3x32xf32> to vector<1x32xf32>
    %195 = vector.broadcast %194 : vector<1x32xf32> to vector<8x32xf32>
    %196 = arith.mulf %193, %195 : vector<8x32xf32>
    %197 = arith.addf %186, %196 : vector<8x32xf32>
    %c0_88 = arith.constant 0 : index
    %c0_89 = arith.constant 0 : index
    %198 = vector.load %arg19[%c0_88, %c0_89] : memref<1x32xf32, #tpu.memory_space<vmem>>, vector<1x32xf32>
    %199 = vector.broadcast %198 : vector<1x32xf32> to vector<8x32xf32>
    %200 = arith.addf %197, %199 : vector<8x32xf32>
    %201 = arith.negf %200 : vector<8x32xf32>
    %202 = math.exp %201 : vector<8x32xf32>
    %cst_90 = arith.constant 1.000000e+00 : f32
    %203 = vector.broadcast %cst_90 : f32 to vector<8x32xf32>
    %204 = arith.addf %203, %202 : vector<8x32xf32>
    %205 = arith.divf %203, %204 : vector<8x32xf32>
    %206 = arith.mulf %200, %205 : vector<8x32xf32>
    %c0_91 = arith.constant 0 : index
    %c0_92 = arith.constant 0 : index
    %207 = vector.load %arg20[%c0_91, %c0_92] : memref<32x32xf32, #tpu.memory_space<vmem>>, vector<32x32xf32>
    %cst_93 = arith.constant dense<0.000000e+00> : vector<8x32xf32>
    %208 = tpu.matmul %206, %207, %cst_93 {dimension_numbers = #tpu.dot_dimension_numbers<[1], [0], [0], [1], [0, 0, 1, 1], [], []>} : vector<8x32xf32>, vector<32x32xf32>, vector<8x32xf32> -> vector<8x32xf32>
    %c0_94 = arith.constant 0 : index
    %c0_95 = arith.constant 0 : index
    %209 = vector.load %arg21[%c0_94, %c0_95] : memref<1x32xf32, #tpu.memory_space<vmem>>, vector<1x32xf32>
    %210 = vector.broadcast %209 : vector<1x32xf32> to vector<8x32xf32>
    %211 = arith.addf %208, %210 : vector<8x32xf32>
    %212 = arith.addf %136, %211 : vector<8x32xf32>
    %c0_96 = arith.constant 0 : index
    %c0_97 = arith.constant 0 : index
    %213 = vector.load %arg22[%c0_96, %c0_97] : memref<32x64xf32, #tpu.memory_space<vmem>>, vector<32x64xf32>
    %c0_98 = arith.constant 0 : index
    %c0_99 = arith.constant 0 : index
    %214 = vector.load %arg23[%c0_98, %c0_99] : memref<1x64xf32, #tpu.memory_space<vmem>>, vector<1x64xf32>
    %c0_100 = arith.constant 0 : index
    %c0_101 = arith.constant 0 : index
    %215 = vector.load %arg24[%c0_100, %c0_101] : memref<64x32xf32, #tpu.memory_space<vmem>>, vector<64x32xf32>
    %c0_102 = arith.constant 0 : index
    %c0_103 = arith.constant 0 : index
    %216 = vector.load %arg25[%c0_102, %c0_103] : memref<1x32xf32, #tpu.memory_space<vmem>>, vector<1x32xf32>
    %cst_104 = arith.constant dense<0.000000e+00> : vector<8xf32>
    %217 = vector.multi_reduction <add>, %212, %cst_104 [1] : vector<8x32xf32> to vector<8xf32>
    %218 = vector.shape_cast %217 : vector<8xf32> to vector<8x1xf32>
    %cst_105 = arith.constant 3.200000e+01 : f32
    %219 = vector.broadcast %cst_105 : f32 to vector<8x1xf32>
    %220 = arith.divf %218, %219 : vector<8x1xf32>
    %221 = vector.broadcast %220 : vector<8x1xf32> to vector<8x32xf32>
    %222 = arith.subf %212, %221 : vector<8x32xf32>
    %223 = arith.mulf %222, %222 : vector<8x32xf32>
    %cst_106 = arith.constant dense<0.000000e+00> : vector<8xf32>
    %224 = vector.multi_reduction <add>, %223, %cst_106 [1] : vector<8x32xf32> to vector<8xf32>
    %225 = vector.shape_cast %224 : vector<8xf32> to vector<8x1xf32>
    %cst_107 = arith.constant 3.200000e+01 : f32
    %226 = vector.broadcast %cst_107 : f32 to vector<8x1xf32>
    %227 = arith.divf %225, %226 : vector<8x1xf32>
    %cst_108 = arith.constant 9.99999974E-6 : f32
    %228 = vector.broadcast %cst_108 : f32 to vector<8x1xf32>
    %229 = arith.addf %227, %228 : vector<8x1xf32>
    %230 = math.rsqrt %229 : vector<8x1xf32>
    %231 = vector.broadcast %230 : vector<8x1xf32> to vector<8x32xf32>
    %232 = arith.mulf %222, %231 : vector<8x32xf32>
    %cst_109 = arith.constant dense<0.000000e+00> : vector<8x64xf32>
    %233 = tpu.matmul %232, %213, %cst_109 {dimension_numbers = #tpu.dot_dimension_numbers<[1], [0], [0], [1], [0, 0, 1, 1], [], []>} : vector<8x32xf32>, vector<32x64xf32>, vector<8x64xf32> -> vector<8x64xf32>
    %234 = vector.broadcast %214 : vector<1x64xf32> to vector<8x64xf32>
    %235 = arith.addf %233, %234 : vector<8x64xf32>
    %236 = arith.negf %235 : vector<8x64xf32>
    %237 = math.exp %236 : vector<8x64xf32>
    %cst_110 = arith.constant 1.000000e+00 : f32
    %238 = vector.broadcast %cst_110 : f32 to vector<8x64xf32>
    %239 = arith.addf %238, %237 : vector<8x64xf32>
    %240 = arith.divf %238, %239 : vector<8x64xf32>
    %241 = arith.mulf %235, %240 : vector<8x64xf32>
    %cst_111 = arith.constant dense<0.000000e+00> : vector<8x32xf32>
    %242 = tpu.matmul %241, %215, %cst_111 {dimension_numbers = #tpu.dot_dimension_numbers<[1], [0], [0], [1], [0, 0, 1, 1], [], []>} : vector<8x64xf32>, vector<64x32xf32>, vector<8x32xf32> -> vector<8x32xf32>
    %243 = vector.broadcast %216 : vector<1x32xf32> to vector<8x32xf32>
    %244 = arith.addf %242, %243 : vector<8x32xf32>
    %245 = arith.addf %244, %212 : vector<8x32xf32>
    %cst_112 = arith.constant dense<0.000000e+00> : vector<8xf32>
    %246 = vector.multi_reduction <add>, %245, %cst_112 [1] : vector<8x32xf32> to vector<8xf32>
    %247 = vector.shape_cast %246 : vector<8xf32> to vector<8x1xf32>
    %cst_113 = arith.constant 3.200000e+01 : f32
    %248 = vector.broadcast %cst_113 : f32 to vector<8x1xf32>
    %249 = arith.divf %247, %248 : vector<8x1xf32>
    %250 = vector.broadcast %249 : vector<8x1xf32> to vector<8x32xf32>
    %251 = arith.subf %245, %250 : vector<8x32xf32>
    %252 = arith.mulf %251, %251 : vector<8x32xf32>
    %cst_114 = arith.constant dense<0.000000e+00> : vector<8xf32>
    %253 = vector.multi_reduction <add>, %252, %cst_114 [1] : vector<8x32xf32> to vector<8xf32>
    %254 = vector.shape_cast %253 : vector<8xf32> to vector<8x1xf32>
    %cst_115 = arith.constant 3.200000e+01 : f32
    %255 = vector.broadcast %cst_115 : f32 to vector<8x1xf32>
    %256 = arith.divf %254, %255 : vector<8x1xf32>
    %cst_116 = arith.constant 9.99999974E-6 : f32
    %257 = vector.broadcast %cst_116 : f32 to vector<8x1xf32>
    %258 = arith.addf %256, %257 : vector<8x1xf32>
    %259 = math.rsqrt %258 : vector<8x1xf32>
    %260 = vector.broadcast %259 : vector<8x1xf32> to vector<8x32xf32>
    %261 = arith.mulf %251, %260 : vector<8x32xf32>
    %c0_117 = arith.constant 0 : index
    %c0_118 = arith.constant 0 : index
    %262 = vector.load %arg26[%c0_117, %c0_118] : memref<1x32xf32, #tpu.memory_space<vmem>>, vector<1x32xf32>
    %263 = vector.broadcast %262 : vector<1x32xf32> to vector<8x32xf32>
    %264 = arith.mulf %261, %263 : vector<8x32xf32>
    %c0_119 = arith.constant 0 : index
    %c0_120 = arith.constant 0 : index
    %265 = vector.load %arg27[%c0_119, %c0_120] : memref<1x32xf32, #tpu.memory_space<vmem>>, vector<1x32xf32>
    %266 = vector.broadcast %265 : vector<1x32xf32> to vector<8x32xf32>
    %267 = arith.addf %264, %266 : vector<8x32xf32>
    %c0_121 = arith.constant 0 : index
    %c0_122 = arith.constant 0 : index
    %c0_123 = arith.constant 0 : index
    %268 = vector.load %arg28[%c0_121, %c0_122, %c0_123] : memref<1x8x32xf32, #tpu.memory_space<vmem>>, vector<1x8x32xf32>
    %269 = vector.shape_cast %268 : vector<1x8x32xf32> to vector<8x32xf32>
    %270 = vector.shape_cast %267 : vector<8x32xf32> to vector<1x8x32xf32>
    tpu.vector_store %arg28[%c0_121, %c0_122, %c0_123], %270 {strides = array<i32>} : memref<1x8x32xf32, #tpu.memory_space<vmem>>, vector<1x8x32xf32>,
    return
  }
  func.func @transform_0(%arg0: i32) -> (i32, i32, i32) {
    %c0_i32 = arith.constant 0 : i32
    %c0_i32_0 = arith.constant 0 : i32
    %c0_i32_1 = arith.constant 0 : i32
    return %arg0, %c0_i32, %c0_i32_0 : i32, i32, i32
  }
  func.func @transform_1(%arg0: i32) -> (i32, i32) {
    %c0_i32 = arith.constant 0 : i32
    %c0_i32_0 = arith.constant 0 : i32
    %c0_i32_1 = arith.constant 0 : i32
    return %c0_i32, %c0_i32_0 : i32, i32
  }
  func.func @transform_2(%arg0: i32) -> (i32, i32) {
    %c0_i32 = arith.constant 0 : i32
    %c0_i32_0 = arith.constant 0 : i32
    %c0_i32_1 = arith.constant 0 : i32
    return %c0_i32, %c0_i32_0 : i32, i32
  }
  func.func @transform_3(%arg0: i32) -> (i32, i32) {
    %c0_i32 = arith.constant 0 : i32
    %c0_i32_0 = arith.constant 0 : i32
    %c0_i32_1 = arith.constant 0 : i32
    return %c0_i32, %c0_i32_0 : i32, i32
  }
  func.func @transform_4(%arg0: i32) -> (i32, i32) {
    %c0_i32 = arith.constant 0 : i32
    %c0_i32_0 = arith.constant 0 : i32
    %c0_i32_1 = arith.constant 0 : i32
    return %c0_i32, %c0_i32_0 : i32, i32
  }
  func.func @transform_5(%arg0: i32) -> (i32, i32) {
    %c0_i32 = arith.constant 0 : i32
    %c0_i32_0 = arith.constant 0 : i32
    %c0_i32_1 = arith.constant 0 : i32
    return %c0_i32, %c0_i32_0 : i32, i32
  }
  func.func @transform_6(%arg0: i32) -> (i32, i32) {
    %c0_i32 = arith.constant 0 : i32
    %c0_i32_0 = arith.constant 0 : i32
    %c0_i32_1 = arith.constant 0 : i32
    return %c0_i32, %c0_i32_0 : i32, i32
  }
  func.func @transform_7(%arg0: i32) -> (i32, i32) {
    %c0_i32 = arith.constant 0 : i32
    %c0_i32_0 = arith.constant 0 : i32
    %c0_i32_1 = arith.constant 0 : i32
    return %c0_i32, %c0_i32_0 : i32, i32
  }
  func.func @transform_8(%arg0: i32) -> (i32, i32) {
    %c0_i32 = arith.constant 0 : i32
    %c0_i32_0 = arith.constant 0 : i32
    %c0_i32_1 = arith.constant 0 : i32
    return %c0_i32, %c0_i32_0 : i32, i32
  }
  func.func @transform_9(%arg0: i32) -> (i32, i32) {
    %c0_i32 = arith.constant 0 : i32
    %c0_i32_0 = arith.constant 0 : i32
    %c0_i32_1 = arith.constant 0 : i32
    return %c0_i32, %c0_i32_0 : i32, i32
  }
  func.func @transform_10(%arg0: i32) -> (i32, i32) {
    %c0_i32 = arith.constant 0 : i32
    %c0_i32_0 = arith.constant 0 : i32
    %c0_i32_1 = arith.constant 0 : i32
    return %c0_i32, %c0_i32_0 : i32, i32
  }
  func.func @transform_11(%arg0: i32) -> (i32, i32) {
    %c0_i32 = arith.constant 0 : i32
    %c0_i32_0 = arith.constant 0 : i32
    %c0_i32_1 = arith.constant 0 : i32
    return %c0_i32, %c0_i32_0 : i32, i32
  }
  func.func @transform_12(%arg0: i32) -> (i32, i32) {
    %c0_i32 = arith.constant 0 : i32
    %c0_i32_0 = arith.constant 0 : i32
    %c0_i32_1 = arith.constant 0 : i32
    return %c0_i32, %c0_i32_0 : i32, i32
  }
  func.func @transform_13(%arg0: i32) -> (i32, i32) {
    %c0_i32 = arith.constant 0 : i32
    %c0_i32_0 = arith.constant 0 : i32
    %c0_i32_1 = arith.constant 0 : i32
    return %c0_i32, %c0_i32_0 : i32, i32
  }
  func.func @transform_14(%arg0: i32) -> (i32, i32) {
    %c0_i32 = arith.constant 0 : i32
    %c0_i32_0 = arith.constant 0 : i32
    %c0_i32_1 = arith.constant 0 : i32
    return %c0_i32, %c0_i32_0 : i32, i32
  }
  func.func @transform_15(%arg0: i32) -> (i32, i32) {
    %c0_i32 = arith.constant 0 : i32
    %c0_i32_0 = arith.constant 0 : i32
    %c0_i32_1 = arith.constant 0 : i32
    return %c0_i32, %c0_i32_0 : i32, i32
  }
  func.func @transform_16(%arg0: i32) -> (i32, i32) {
    %c0_i32 = arith.constant 0 : i32
    %c0_i32_0 = arith.constant 0 : i32
    %c0_i32_1 = arith.constant 0 : i32
    return %c0_i32, %c0_i32_0 : i32, i32
  }
  func.func @transform_17(%arg0: i32) -> (i32, i32) {
    %c0_i32 = arith.constant 0 : i32
    %c0_i32_0 = arith.constant 0 : i32
    %c0_i32_1 = arith.constant 0 : i32
    return %c0_i32, %c0_i32_0 : i32, i32
  }
  func.func @transform_18(%arg0: i32) -> (i32, i32) {
    %c0_i32 = arith.constant 0 : i32
    %c0_i32_0 = arith.constant 0 : i32
    %c0_i32_1 = arith.constant 0 : i32
    return %c0_i32, %c0_i32_0 : i32, i32
  }
  func.func @transform_19(%arg0: i32) -> (i32, i32) {
    %c0_i32 = arith.constant 0 : i32
    %c0_i32_0 = arith.constant 0 : i32
    %c0_i32_1 = arith.constant 0 : i32
    return %c0_i32, %c0_i32_0 : i32, i32
  }
  func.func @transform_20(%arg0: i32) -> (i32, i32) {
    %c0_i32 = arith.constant 0 : i32
    %c0_i32_0 = arith.constant 0 : i32
    %c0_i32_1 = arith.constant 0 : i32
    return %c0_i32, %c0_i32_0 : i32, i32
  }
  func.func @transform_21(%arg0: i32) -> (i32, i32) {
    %c0_i32 = arith.constant 0 : i32
    %c0_i32_0 = arith.constant 0 : i32
    %c0_i32_1 = arith.constant 0 : i32
    return %c0_i32, %c0_i32_0 : i32, i32
  }
  func.func @transform_22(%arg0: i32) -> (i32, i32) {
    %c0_i32 = arith.constant 0 : i32
    %c0_i32_0 = arith.constant 0 : i32
    %c0_i32_1 = arith.constant 0 : i32
    return %c0_i32, %c0_i32_0 : i32, i32
  }
  func.func @transform_23(%arg0: i32) -> (i32, i32) {
    %c0_i32 = arith.constant 0 : i32
    %c0_i32_0 = arith.constant 0 : i32
    %c0_i32_1 = arith.constant 0 : i32
    return %c0_i32, %c0_i32_0 : i32, i32
  }
  func.func @transform_24(%arg0: i32) -> (i32, i32) {
    %c0_i32 = arith.constant 0 : i32
    %c0_i32_0 = arith.constant 0 : i32
    %c0_i32_1 = arith.constant 0 : i32
    return %c0_i32, %c0_i32_0 : i32, i32
  }
  func.func @transform_25(%arg0: i32) -> (i32, i32) {
    %c0_i32 = arith.constant 0 : i32
    %c0_i32_0 = arith.constant 0 : i32
    %c0_i32_1 = arith.constant 0 : i32
    return %c0_i32, %c0_i32_0 : i32, i32
  }
  func.func @transform_26(%arg0: i32) -> (i32, i32) {
    %c0_i32 = arith.constant 0 : i32
    %c0_i32_0 = arith.constant 0 : i32
    %c0_i32_1 = arith.constant 0 : i32
    return %c0_i32, %c0_i32_0 : i32, i32
  }
  func.func @transform_27(%arg0: i32) -> (i32, i32, i32) {
    %c0_i32 = arith.constant 0 : i32
    %c0_i32_0 = arith.constant 0 : i32
    %c0_i32_1 = arith.constant 0 : i32
    return %arg0, %c0_i32, %c0_i32_0 : i32, i32, i32
  }
}

</mosaic_0001>

<bundles_post_ra>
// kernel: tpu_custom_call.1
= control target key start
LH: loop header
LB: loop body
LE: loop exit
PB: predicated region body
PF: predicated region fallthrough
CT: control target
= control target key end

     0   :  { %s4764_s0 = inlined_call_operand.hbm [shape: f32[2,8,32], index: 0, kind: input, shape index: {}]   ;;  %s4765_s1 = inlined_call_operand.vmem [shape: f32[32,64], index: 1, kind: input, shape index: {}]   ;;  %s4766_s2 = inlined_call_operand.hbm [shape: f32[1,64], index: 2, kind: input, shape index: {}]   ;;  %s4767_s3 = inlined_call_operand.vmem [shape: f32[64,32], index: 3, kind: input, shape index: {}]   ;;  %s4768_s4 = inlined_call_operand.hbm [shape: f32[1,32], index: 4, kind: input, shape index: {}]   ;;  %s4769_s5 = inlined_call_operand.vmem [shape: f32[32,32], index: 5, kind: input, shape index: {}]   ;;  %s4770_s6 = inlined_call_operand.hbm [shape: f32[1,32], index: 6, kind: input, shape index: {}]   ;;  %s4771_s7 = inlined_call_operand.vmem [shape: f32[32,32], index: 7, kind: input, shape index: {}]   ;;  %s4772_s8 = inlined_call_operand.hbm [shape: f32[1,32], index: 8, kind: input, shape index: {}]   ;;  %s4773_s9 = inlined_call_operand.vmem [shape: f32[32,32], index: 9, kind: input, shape index: {}]   ;;  %s4774_s10 = inlined_call_operand.hbm [shape: f32[1,32], index: 10, kind: input, shape index: {}]   ;;  %s4775_s11 = inlined_call_operand.vmem [shape: f32[32,32], index: 11, kind: input, shape index: {}]   ;;  %s4776_s12 = inlined_call_operand.hbm [shape: f32[1,32], index: 12, kind: input, shape index: {}]   ;;  %s4777_s13 = inlined_call_operand.hbm [shape: f32[32,32], index: 13, kind: input, shape index: {}]   ;;  %s4778_s14 = inlined_call_operand.hbm [shape: f32[1,32], index: 14, kind: input, shape index: {}]   ;;  %s4779_s15 = inlined_call_operand.hbm [shape: f32[32,32], index: 15, kind: input, shape index: {}]   ;;  %s4780_s16 = inlined_call_operand.hbm [shape: f32[1,32], index: 16, kind: input, shape index: {}]   ;;  %s4781_s17 = inlined_call_operand.hbm [shape: f32[3,32], index: 17, kind: input, shape index: {}]   ;;  %s4782_s18 = inlined_call_operand.hbm [shape: f32[1,32], index: 18, kind: input, shape index: {}]   ;;  %s4783_s19 = inlined_call_operand.vmem [shape: f32[32,32], index: 19, kind: input, shape index: {}]   ;;  %s4784_s20 = inlined_call_operand.vmem [shape: f32[1,32], index: 20, kind: input, shape index: {}]   ;;  %s4785_s21 = inlined_call_operand.hbm [shape: f32[32,64], index: 21, kind: input, shape index: {}]   ;;  %s4786_s22 = inlined_call_operand.vmem [shape: f32[1,64], index: 22, kind: input, shape index: {}]   ;;  %s4787_s23 = inlined_call_operand.vmem [shape: f32[64,32], index: 23, kind: input, shape index: {}]   ;;  %s4788_s24 = inlined_call_operand.vmem [shape: f32[1,32], index: 24, kind: input, shape index: {}]   ;;  %s4789_s25 = inlined_call_operand.vmem [shape: f32[1,32], index: 25, kind: input, shape index: {}]   ;;  %s4790_s26 = inlined_call_operand.vmem [shape: f32[1,32], index: 26, kind: input, shape index: {}]   ;;  %s4791_s27 = inlined_call_operand.hbm [shape: f32[2,8,32], index: 27, kind: output, shape index: {}]  }
   0x1   :  { %4811 = sst [smem:[#allocation36_spill]] %s4764_s0 }
   0x2   :  { %4812 = sst [smem:[#allocation37_spill]] %s4765_s1 }
   0x3   :  { %4813 = sst [smem:[#allocation38_spill]] %s4766_s2 }
   0x4   :  { %4814 = sst [smem:[#allocation39_spill]] %s4767_s3 }
   0x5   :  { %4815 = sst [smem:[#allocation40_spill]] %s4768_s4 }
   0x6   :  { %4816 = sst [smem:[#allocation41_spill]] %s4769_s5 }
   0x7   :  { %4817 = sst [smem:[#allocation42_spill]] %s4770_s6 }
   0x8   :  { %4818 = sst [smem:[#allocation43_spill]] %s4771_s7 }
   0x9   :  { %4819 = sst [smem:[#allocation44_spill]] %s4772_s8 }
   0xa   :  { %4820 = sst [smem:[#allocation45_spill]] %s4773_s9 }
   0xb   :  { %4821 = sst [smem:[#allocation46_spill]] %s4774_s10 }
   0xc   :  { %4822 = sst [smem:[#allocation47_spill]] %s4775_s11 }
   0xd   :  { %4823 = sst [smem:[#allocation48_spill]] %s4776_s12 }
   0xe   :  { %4824 = sst [smem:[#allocation49_spill]] %s4777_s13 }
   0xf   :  { %4825 = sst [smem:[#allocation50_spill]] %s4778_s14 }
  0x10   :  { %4826 = sst [smem:[#allocation51_spill]] %s4779_s15 }
  0x11   :  { %4827 = sst [smem:[#allocation52_spill]] %s4780_s16 }
  0x12   :  { %4828 = sst [smem:[#allocation53_spill]] %s4781_s17 }
  0x13   :  { %4829 = sst [smem:[#allocation54_spill]] %s4782_s18 }
  0x14   :  { %4830 = sst [smem:[#allocation55_spill]] %s4785_s21 }
  0x15   :  { %4831 = sst [smem:[#allocation56_spill]] %s4789_s25 }
  0x16   :  { %4832 = sst [smem:[#allocation57_spill]] %s4790_s26 }
  0x17   :  { %4833 = sst [smem:[#allocation58_spill]] %s4791_s27 }
  0x18   :  { %32 = vsyncpa [#allocation4], 0 }
  0x19   :  { %34 = vsyncpa [#allocation4 + $0x1], 0 }
  0x1a   :  { %35 = vsyncpa [#allocation7], 0 }
  0x1b   :  { %36 = vsyncpa [#allocation10], 0 }
  0x1c   :  { %37 = vsyncpa [#allocation13], 0 }
  0x1d   :  { %38 = vsyncpa [#allocation16], 0 }
  0x1e   :  { %39 = vsyncpa [#allocation19], 0 }
  0x1f   :  { %40 = vsyncpa [#allocation22], 0 }
  0x20   :  { %41 = vsyncpa [#allocation25], 0 }
  0x21   :  { %42 = vsyncpa [#allocation5], 0 }
  0x22   :  { %44 = vsyncpa [#allocation5 + $0x1], 0  ;;  %s4157_s7 = smov 0   ;;  %s4159_s4 = smov 0  }
  0x23   :  { %s4161_s8 = smov 0   ;;  %s4163_s30 = smov 0  }
  0x24 LB: > { %s3992_s9 = smov [#allocation6]   ;;  %s4178_s28 = sadd.s32 4294967295, %s3990_s30   ;;  %s3990_s30 = sphi %s4163_s30, %s4889_s30   ;;  %s3986_s8 = sphi %s4161_s8, %s4888_s8   ;;  %s3982_s4 = sphi %s4159_s4, %s4887_s4   ;;  %s3978_s7 = sphi %s4157_s7, %s4886_s7  }
  0x25   : > { %s669_s5 = sshll.u32 %s3992_s9, 4  ;;  %p2969_p0 = scmp.ge.s32.totalorder %s3990_s30, 1  ;;  %s670_s5 = int_to_ptr.vmem [resolvable:$true] %s669_s5 }
  0x26   : > { %p4801_p1 = scmp.eq.s32.totalorder %s4178_s28, 0  ;;  %p653_p2 = scmp.lt.s32.totalorder %s3990_s30, 3 }
  0x27   : > { %s3993_s10 = smov [#allocation9]   ;;  %s3994_s1 = smov [#allocation12]  }
  0x28   : > { %p4183_p3 = pnand %p2969_p0, %p653_p2  ;;  %s697_s29 = sshll.u32 %s3993_s10, 4  ;;  %s4190_s29 = int_to_ptr.vmem [resolvable:$true] %s697_s29 }
  0x29   : > { %s725_s6 = sshll.u32 %s3994_s1, 4  ;;  %s3995_s2 = smov [#allocation15]   ;;  %s4198_s6 = int_to_ptr.vmem [resolvable:$true] %s725_s6 }
  0x2a   : > { %s4834_s0 = scalar_select %p4183_p3, 1, 0 }
  0x2b   : > { %p3359_p5 = pneg %p4183_p3  ;;  %s4200_s3 = sshll.u32 %s3995_s2, 4  ;;  %s750_s3 = int_to_ptr.vmem [resolvable:$true] %s4200_s3 }
  0x2c   : > { %s3543_s10 = scalar_lea.vmem %s670_s5, 16  ;;  %s3550_s1 = scalar_lea.vmem %s670_s5, 32 }
  0x2d   : > { %p4194_p6 = pnand %p3359_p5, %p4801_p1  ;;  %p3544_p8 = scmp.ne.s32.totalorder %s670_s5, %s3543_s10 }
  0x2e   : > { %p3551_p11 = scmp.lt.s32.totalorder %s670_s5, %s670_s5  ;;  %p3552_p12 = scmp.lt.s32.totalorder %s3550_s1, %s3543_s10 }
  0x2f   : > { %p4204_p7 = pneg %p4194_p6 }
  0x30   : > { %p3553_p13 = por %p3552_p12, %p3551_p11 }
  0x31   : > { %p3546_p9 = pnand %p3544_p8, %p4204_p7 }
  0x33   : > { %p3547_p10 = pneg %p3546_p9 }
  0x35   : > { %p3554_p0 = pnand %p3553_p13, %p3547_p10 }
  0x37   : > { %3557 = shalt.err (!%p3554_p0)
}
  0x38   : > { %s4837_s26 = sld [smem:[#allocation38_spill]]  ;;  %s3569_s25 = scalar_lea.vmem %s4190_s29, 16 }
  0x39   : > { %p3570_p2 = scmp.ne.s32.totalorder %s4190_s29, %s3569_s25  ;;  %s3576_s10 = scalar_lea.vmem %s4190_s29, 32 }
  0x3a   : > { %p3577_p9 = scmp.lt.s32.totalorder %s4190_s29, %s4190_s29  ;;  %p3578_p10 = scmp.lt.s32.totalorder %s3576_s10, %s3569_s25 }
  0x3b   : > { %p3572_p5 = pnand %p3570_p2, %p4204_p7 }
  0x3c   : > { %p3579_p11 = por %p3578_p10, %p3577_p9 }
  0x3d   : > { %p3573_p8 = pneg %p3572_p5 }
  0x3e   : > { %3362 = dma.hbm_to_vmem [thread:$0]  (!%p4194_p6), %s4837_s26, 16, %s670_s5, [#allocation7]  }
  0x3f   : > { %p3580_p12 = pnand %p3579_p11, %p3573_p8 }
  0x41   : > { %3583 = shalt.err (!%p3580_p12)
}
  0x42   : > { %s4838_s2 = sld [smem:[#allocation42_spill]]  ;;  %s3595_s26 = scalar_lea.vmem %s4198_s6, 16 }
  0x43   : > { %p3596_p13 = scmp.ne.s32.totalorder %s4198_s6, %s3595_s26  ;;  %s3602_s25 = scalar_lea.vmem %s4198_s6, 32 }
  0x44   : > { %p3603_p5 = scmp.lt.s32.totalorder %s4198_s6, %s4198_s6  ;;  %p3604_p8 = scmp.lt.s32.totalorder %s3602_s25, %s3595_s26 }
  0x45   : > { %p3598_p0 = pnand %p3596_p13, %p4204_p7 }
  0x46   : > { %p3605_p9 = por %p3604_p8, %p3603_p5 }
  0x47   : > { %p3599_p2 = pneg %p3598_p0 }
  0x48   : > { %3368 = dma.hbm_to_vmem [thread:$0]  (!%p4194_p6), %s4838_s2, 16, %s4190_s29, [#allocation10]  }
  0x49   : > { %p3606_p10 = pnand %p3605_p9, %p3599_p2 }
  0x4b   : > { %3609 = shalt.err (!%p3606_p10)
}
  0x4c   : > { %s4839_s27 = sld [smem:[#allocation46_spill]]  ;;  %s3621_s29 = scalar_lea.vmem %s750_s3, 512 }
  0x4d   : > { %p3622_p11 = scmp.ne.s32.totalorder %s750_s3, %s3621_s29  ;;  %p3629_p0 = scmp.lt.s32.totalorder %s750_s3, %s750_s3 }
  0x4e   : > { %p3630_p4 = scmp.lt.s32.totalorder %s3621_s29, %s3621_s29 }
  0x4f   : > { %p3624_p12 = pnand %p3622_p11, %p4204_p7 }
  0x50   : > { %p3631_p5 = por %p3630_p4, %p3629_p0 }
  0x51   : > { %p3625_p13 = pneg %p3624_p12 }
  0x52   : > { %3374 = dma.hbm_to_vmem [thread:$0]  (!%p4194_p6), %s4839_s27, 16, %s4198_s6, [#allocation13]  }
  0x53   : > { %p3632_p2 = pnand %p3631_p5, %p3625_p13 }
  0x55   : > { %3635 = shalt.err (!%p3632_p2)
}
  0x56   : > { %s4800_s1 = smov 128   ;;  %s4803_s2 = smov 8  }
  0x57   : > { %s4840_s13 = sld [smem:[#allocation49_spill]]  ;;  %s3998_s25 = smov [#allocation18]  }
  0x58   : > { %s773_s5 = sshll.u32 %s3998_s25, 4  ;;  %s3999_s10 = smov [#allocation21]   ;;  %s774_s5 = int_to_ptr.vmem [resolvable:$true] %s773_s5 }
  0x59   : > { %s798_s27 = sshll.u32 %s3999_s10, 4  ;;  %s3647_s29 = scalar_lea.vmem %s774_s5, 512  ;;  %s799_s27 = int_to_ptr.vmem [resolvable:$true] %s798_s27 }
  0x5a   : > { %p3648_p4 = scmp.ne.s32.totalorder %s774_s5, %s3647_s29  ;;  %p3655_p10 = scmp.lt.s32.totalorder %s774_s5, %s774_s5 }
  0x5b   : > { %p3656_p11 = scmp.lt.s32.totalorder %s3647_s29, %s3647_s29 }
  0x5c   : > { %p3650_p8 = pnand %p3648_p4, %p4204_p7 }
  0x5d   : > { %3380 = dma.hbm_to_vmem [thread:$0]  (!%p4194_p6), %s4840_s13, 512, %s750_s3, [#allocation16], %s4800_s1, %s4800_s1, %s4803_s2  }
  0x5e   : > { %p3651_p9 = pneg %p3650_p8  ;;  %p3657_p12 = por %p3656_p11, %p3655_p10 }
  0x60   : > { %p3658_p13 = pnand %p3657_p12, %p3651_p9 }
  0x62   : > { %3661 = shalt.err (!%p3658_p13)
}
  0x63   : > { %s4841_s15 = sld [smem:[#allocation51_spill]]  ;;  %s3673_s26 = scalar_lea.vmem %s799_s27, 64 }
  0x64   : > { %p3674_p0 = scmp.ne.s32.totalorder %s799_s27, %s3673_s26  ;;  %p3681_p4 = scmp.lt.s32.totalorder %s799_s27, %s799_s27 }
  0x65   : > { %p3682_p8 = scmp.lt.s32.totalorder %s3673_s26, %s3673_s26 }
  0x66   : > { %p3676_p5 = pnand %p3674_p0, %p4204_p7 }
  0x67   : > { %p3683_p10 = por %p3682_p8, %p3681_p4 }
  0x68   : > { %p3677_p2 = pneg %p3676_p5 }
  0x69   : > { %3386 = dma.hbm_to_vmem [thread:$0]  (!%p4194_p6), %s4841_s15, 512, %s774_s5, [#allocation19], %s4800_s1, %s4800_s1, %s4803_s2  }
  0x6a   : > { %p3684_p9 = pnand %p3683_p10, %p3677_p2 }
  0x6c   : > { %3687 = shalt.err (!%p3684_p9)
}
  0x6d   : > { %s4842_s17 = sld [smem:[#allocation53_spill]]  ;;  %s4000_s29 = smov [#allocation8]  }
  0x6e   : > { %s683_s3 = sshll.u32 %s4000_s29, 4  ;;  %s4001_s5 = smov [#allocation11]   ;;  %s684_s3 = int_to_ptr.vmem [resolvable:$true] %s683_s3 }
  0x6f   : > { %s711_s6 = sshll.u32 %s4001_s5, 4  ;;  %s3699_s1 = scalar_lea.vmem %s684_s3, 16  ;;  %s712_s6 = int_to_ptr.vmem [resolvable:$true] %s711_s6 }
  0x70   : > { %p3700_p11 = scmp.ne.s32.totalorder %s684_s3, %s3699_s1  ;;  %s3706_s26 = scalar_lea.vmem %s684_s3, 32 }
  0x71   : > { %p3707_p0 = scmp.lt.s32.totalorder %s684_s3, %s684_s3  ;;  %p3708_p5 = scmp.lt.s32.totalorder %s3706_s26, %s3699_s1 }
  0x72   : > { %p3702_p12 = pnand %p3700_p11, %p4204_p7 }
  0x73   : > { %3392 = dma.hbm_to_vmem [thread:$0]  (!%p4194_p6), %s4842_s17, 64, %s799_s27, [#allocation22]  }
  0x74   : > { %p3703_p13 = pneg %p3702_p12  ;;  %p3709_p2 = por %p3708_p5, %p3707_p0 }
  0x76   : > { %p3710_p4 = pnand %p3709_p2, %p3703_p13 }
  0x78   : > { %3713 = shalt.err (!%p3710_p4)
}
  0x79   : > { %s4843_s10 = sld [smem:[#allocation40_spill]]  ;;  %s3725_s29 = scalar_lea.vmem %s712_s6, 16 }
  0x7a   : > { %p3726_p8 = scmp.ne.s32.totalorder %s712_s6, %s3725_s29  ;;  %s3732_s5 = scalar_lea.vmem %s712_s6, 32 }
  0x7b   : > { %p3733_p11 = scmp.lt.s32.totalorder %s712_s6, %s712_s6  ;;  %p3734_p12 = scmp.lt.s32.totalorder %s3732_s5, %s3725_s29 }
  0x7c   : > { %p3728_p10 = pnand %p3726_p8, %p4204_p7 }
  0x7d   : > { %p3735_p1 = por %p3734_p12, %p3733_p11 }
  0x7e   : > { %p3729_p9 = pneg %p3728_p10 }
  0x7f   : > { %3365 = dma.hbm_to_vmem [thread:$0]  (!%p4194_p6), %s4843_s10, 16, %s684_s3, [#allocation7]  }
  0x80   : > { %p3736_p3 = pnand %p3735_p1, %p3729_p9 }
  0x82   : > { %3739 = shalt.err (!%p3736_p3)
}
  0x83   : > { %s4844_s2 = sld [smem:[#allocation44_spill]]  ;;  %s4002_s27 = smov [#allocation14]  }
  0x84   : > { %s739_s3 = sshll.u32 %s4002_s27, 4  ;;  %s4003_s25 = smov [#allocation17]   ;;  %s740_s3 = int_to_ptr.vmem [resolvable:$true] %s739_s3 }
  0x85   : > { %s763_s10 = sshll.u32 %s4003_s25, 4  ;;  %s3751_s13 = scalar_lea.vmem %s740_s3, 16  ;;  %s764_s10 = int_to_ptr.vmem [resolvable:$true] %s763_s10 }
  0x86   : > { %p3752_p13 = scmp.ne.s32.totalorder %s740_s3, %s3751_s13  ;;  %s3758_s29 = scalar_lea.vmem %s740_s3, 32 }
  0x87   : > { %p3759_p1 = scmp.lt.s32.totalorder %s740_s3, %s740_s3  ;;  %p3760_p3 = scmp.lt.s32.totalorder %s3758_s29, %s3751_s13 }
  0x88   : > { %p3754_p0 = pnand %p3752_p13, %p4204_p7 }
  0x89   : > { %3371 = dma.hbm_to_vmem [thread:$0]  (!%p4194_p6), %s4844_s2, 16, %s712_s6, [#allocation10]  }
  0x8a   : > { %p3755_p5 = pneg %p3754_p0  ;;  %p3761_p2 = por %p3760_p3, %p3759_p1 }
  0x8c   : > { %p3762_p4 = pnand %p3761_p2, %p3755_p5 }
  0x8e   : > { %3765 = shalt.err (!%p3762_p4)
}
  0x8f   : > { %s4845_s12 = sld [smem:[#allocation48_spill]]  ;;  %s3777_s5 = scalar_lea.vmem %s764_s10, 16 }
  0x90   : > { %p3778_p8 = scmp.ne.s32.totalorder %s764_s10, %s3777_s5  ;;  %s3784_s1 = scalar_lea.vmem %s764_s10, 32 }
  0x91   : > { %p3785_p11 = scmp.lt.s32.totalorder %s764_s10, %s764_s10  ;;  %p3786_p12 = scmp.lt.s32.totalorder %s3784_s1, %s3777_s5 }
  0x92   : > { %p3780_p10 = pnand %p3778_p8, %p4204_p7 }
  0x93   : > { %p3787_p13 = por %p3786_p12, %p3785_p11 }
  0x94   : > { %p3781_p9 = pneg %p3780_p10 }
  0x95   : > { %3377 = dma.hbm_to_vmem [thread:$0]  (!%p4194_p6), %s4845_s12, 16, %s740_s3, [#allocation13]  }
  0x96   : > { %p3788_p0 = pnand %p3787_p13, %p3781_p9 }
  0x98   : > { %3791 = shalt.err (!%p3788_p0)
}
  0x99   : > { %s4846_s14 = sld [smem:[#allocation50_spill]]  ;;  %s4004_s27 = smov [#allocation20]  }
  0x9a   : > { %s787_s3 = sshll.u32 %s4004_s27, 4  ;;  %s4005_s25 = smov [#allocation23]   ;;  %s788_s3 = int_to_ptr.vmem [resolvable:$true] %s787_s3 }
  0x9b   : > { %s809_s29 = sshll.u32 %s4005_s25, 4  ;;  %s3803_s2 = scalar_lea.vmem %s788_s3, 16  ;;  %s810_s29 = int_to_ptr.vmem [resolvable:$true] %s809_s29 }
  0x9c   : > { %p3804_p5 = scmp.ne.s32.totalorder %s788_s3, %s3803_s2  ;;  %s3810_s6 = scalar_lea.vmem %s788_s3, 32 }
  0x9d   : > { %p3811_p2 = scmp.lt.s32.totalorder %s788_s3, %s788_s3  ;;  %p3812_p4 = scmp.lt.s32.totalorder %s3810_s6, %s3803_s2 }
  0x9e   : > { %p3806_p1 = pnand %p3804_p5, %p4204_p7 }
  0x9f   : > { %3383 = dma.hbm_to_vmem [thread:$0]  (!%p4194_p6), %s4846_s14, 16, %s764_s10, [#allocation16]  }
  0xa0   : > { %p3807_p3 = pneg %p3806_p1  ;;  %p3813_p8 = por %p3812_p4, %p3811_p2 }
  0xa2   : > { %p3814_p10 = pnand %p3813_p8, %p3807_p3 }
  0xa4   : > { %3817 = shalt.err (!%p3814_p10)
}
  0xa5   : > { %s4847_s16 = sld [smem:[#allocation52_spill]]  ;;  %s3829_s1 = scalar_lea.vmem %s810_s29, 16 }
  0xa6   : > { %p3830_p9 = scmp.ne.s32.totalorder %s810_s29, %s3829_s1  ;;  %s3836_s13 = scalar_lea.vmem %s810_s29, 32 }
  0xa7   : > { %p3837_p13 = scmp.lt.s32.totalorder %s810_s29, %s810_s29  ;;  %p3838_p0 = scmp.lt.s32.totalorder %s3836_s13, %s3829_s1 }
  0xa8   : > { %p3832_p11 = pnand %p3830_p9, %p4204_p7 }
  0xa9   : > { %p3839_p5 = por %p3838_p0, %p3837_p13 }
  0xaa   : > { %p3833_p12 = pneg %p3832_p11 }
  0xab   : > { %3389 = dma.hbm_to_vmem [thread:$0]  (!%p4194_p6), %s4847_s16, 16, %s788_s3, [#allocation19]  }
  0xac   : > { %p3840_p1 = pnand %p3839_p5, %p3833_p12 }
  0xae   : > { %3843 = shalt.err (!%p3840_p1)
}
  0xaf   : > { %s4848_s18 = sld [smem:[#allocation54_spill]]  ;;  %s4006_s25 = smov [#allocation24]  }
  0xb0   : > { %s825_s3 = sshll.u32 %s4006_s25, 4  ;;  %s826_s3 = int_to_ptr.vmem [resolvable:$true] %s825_s3 }
  0xb1   : > { %s3855_s2 = scalar_lea.vmem %s826_s3, 512  ;;  %p3863_p8 = scmp.lt.s32.totalorder %s826_s3, %s826_s3 }
  0xb2   : > { %p3856_p3 = scmp.ne.s32.totalorder %s826_s3, %s3855_s2  ;;  %p3864_p10 = scmp.lt.s32.totalorder %s3855_s2, %s3855_s2 }
  0xb4   : > { %p3858_p2 = pnand %p3856_p3, %p4204_p7  ;;  %p3865_p9 = por %p3864_p10, %p3863_p8 }
  0xb5   : > { %3395 = dma.hbm_to_vmem [thread:$0]  (!%p4194_p6), %s4848_s18, 16, %s810_s29, [#allocation22]  }
  0xb6   : > { %p3859_p4 = pneg %p3858_p2 }
  0xb8   : > { %p3866_p11 = pnand %p3865_p9, %p3859_p4 }
  0xba   : > { %3869 = shalt.err (!%p3866_p11)
}
  0xbb   : > { %s4849_s6 = smov 8   ;;  %s4850_s10 = smov 128  }
  0xbc   : > { %s4851_s21 = sld [smem:[#allocation55_spill]]  ;;  %s2968_s11 = sadd.s32 4294967294, %s3990_s30  }
  0xbd   : > { %s4323_s9 = sadd.s32 1, %s3990_s30   ;;  %s57_s1 = sadd.s32 1, %s3986_s8 }
  0xbe   : > { %s54_s13 = ssub.s32 %s3990_s30, %s4323_s9  ;;  %p64_p7 = scmp.ne.s32.totalorder %s3986_s8, %s3982_s4 }
  0xbf   : > { %p55_p12 = scmp.eq.s32.totalorder %s54_s13, 0  ;;  %p65_p13 = scmp.eq.s32.totalorder %s3990_s30, 0 }
  0xc0   : > { %p70_p0 = scmp.ne.s32.totalorder %s3982_s4, %s3978_s7  ;;  %p640_p5 = scmp.eq.s32.totalorder %s4178_s28, 1 }
  0xc1   : > { %s4335_s26 = scalar_select %p55_p12, %s3986_s8, %s57_s1  }
  0xc2   : > { %3398 = dma.hbm_to_vmem [thread:$0]  (!%p4194_p6), %s4851_s21, 512, %s826_s3, [#allocation25], %s4850_s10, %s4850_s10, %s4849_s6  }
  0xc3   : > { %p66_p1 = por %p65_p13, %p64_p7  ;;  %p4852_p3 = scmp.eq.s32.totalorder %s4178_s28, 0 }
  0xc4   : > { %p4343_p6 = por %p640_p5, %p64_p7  ;;  %p646_p4 = scmp.eq.s32.totalorder %s2968_s11, 1 }
  0xc5   : > { %p4339_p2 = por %p4852_p3, %p70_p0  ;;  %p3420_p8 = scmp.lt.s32.totalorder %s3990_s30, 2 }
  0xc6   : > { %s4854_s25 = scalar_select %p4343_p6, 1, 0 }
  0xc7   : > { %s4853_s27 = scalar_select %p4339_p2, 1, 0 }
  0xc8   : > { %s854_s3 = sand.u32 1, %s3986_s8   ;;  %p4349_p10 = por %p646_p4, %p70_p0 }
  0xc9   : > { %s2984_s6 = sshll.u32 %s854_s3, 3  ;;  %s2985_s10 = sshll.u32 %s3990_s30, 7 }
  0xca   : > { %s4855_s2 = scalar_select %p4349_p10, 1, 0 }
  0xcb   : > { %s4856_s1 = sld [smem:[#allocation36_spill]]  ;;  %s858_s12 = scalar_lea.vmem [#allocation3], %s2984_s6 }
  0xcc   : > { %s865_s14 = sshll.u32 %s858_s12, 4  ;;  %p4359_p9 = pnand %p3420_p8, %p66_p1  ;;  %s866_s14 = int_to_ptr.vmem [resolvable:$true] %s865_s14 }
  0xcd   : > { %s855_s15 = scalar_lea.sflag [#allocation4], %s854_s3 }
  0xce   : > { %p3872_p7 = pneg %p4359_p9 }
  0xd1   : > { %s4357_s13 = scalar_lea.hbm %s4856_s1, %s2985_s10  ;;  %s3875_s29 = scalar_lea.hbm %s4856_s1, 256 }
  0xd2   : > { %s3870_s16 = scalar_lea.hbm %s4357_s13, 128  ;;  %p3876_p0 = scmp.lt.s32.totalorder %s4357_s13, %s4856_s1 }
  0xd3   : > { %p3871_p11 = scmp.ne.s32.totalorder %s4357_s13, %s3870_s16  ;;  %p3877_p5 = scmp.lt.s32.totalorder %s3875_s29, %s3870_s16 }
  0xd5   : > { %p3873_p12 = pnand %p3872_p7, %p3871_p11  ;;  %p3878_p1 = por %p3877_p5, %p3876_p0 }
  0xd7   : > { %p3874_p13 = pneg %p3873_p12 }
  0xd9   : > { %p3879_p3 = pnand %p3878_p1, %p3874_p13 }
  0xdb   : > { %3882 = shalt.err (!%p3879_p3)
}
  0xdc   : > { %s3883_s12 = scalar_lea.vmem %s866_s14, 128  ;;  %s4007_s3 = smov [#allocation3]  }
  0xdd   : > { %p3884_p4 = scmp.ne.s32.totalorder %s866_s14, %s3883_s12  ;;  %s3888_s18 = sshll.u32 %s4007_s3, 4  ;;  %s3889_s18 = int_to_ptr.vmem [resolvable:$false] %s3888_s18 }
  0xde   : > { %s3890_s21 = scalar_lea.vmem %s3889_s18, 256  ;;  %p3891_p11 = scmp.lt.s32.totalorder %s866_s14, %s3889_s18 }
  0xdf   : > { %p3886_p8 = pnand %p3884_p4, %p3872_p7  ;;  %p3892_p12 = scmp.lt.s32.totalorder %s3890_s21, %s3883_s12 }
  0xe1   : > { %p3887_p10 = pneg %p3886_p8  ;;  %p3893_p6 = por %p3892_p12, %p3891_p11 }
  0xe3   : > { %p3894_p2 = pnand %p3893_p6, %p3887_p10 }
  0xe5   : > { %3897 = shalt.err (!%p3894_p2)
}
  0xe6   : > { %3402 = dma.hbm_to_vmem [thread:$0]  (!%p4359_p9), %s4357_s13, 128, %s866_s14, %s855_s15  }
  0xe7   : > { %p4858_p13 = scmp.ne.s32.totalorder %s4834_s0, 0 }
  0xe8   : > { %s4380_s16 = sand.u32 (!%p4858_p13), 1, %s3982_s4   ;;  %p4859_p6 = scmp.ne.s32.totalorder (!%p4858_p13), %s4853_s27, 0 }
  0xe9   : > { %874 = sbr.rel (%p4858_p13) target bundleno = 4554 (0x11ca), region = 128  ;;  %s2987_s17 = sshll.u32 (!%p4858_p13), %s4380_s16, 3 }
  0xea   : > { %s877_s18 = scalar_lea.sflag (!%p4858_p13), [#allocation4], %s4380_s16  ;;  %s880_s21 = scalar_lea.vmem (!%p4858_p13), [#allocation3], %s2987_s17 }
  0xee   : > { %3941 = dma.done.wait (%p4859_p6), %s877_s18, 128  }
  0xef   : > { %3943 = vsyncadd (%p4859_p6), %s877_s18, 4294967168  ;;  %p4860_p2 = scmp.eq.s32.totalorder %s4178_s28, 0 }
  0xf1   : > { %3945 = dma.done.wait (%p4860_p2), [#allocation7], 32   ;;  %p4861_p10 = pmov %p4860_p2 }
  0xf2   : > { %p4862_p9 = pmov %p4860_p2 }
  0xf3   : > { %3947 = vsyncadd (%p4861_p10), [#allocation7], 4294967264 }
  0xf4   : > { %3949 = dma.done.wait (%p4862_p9), [#allocation10], 32   ;;  %p4863_p7 = pmov %p4860_p2 }
  0xf5   : > { %p4864_p0 = pmov %p4860_p2 }
  0xf6   : > { %3951 = vsyncadd (%p4863_p7), [#allocation10], 4294967264 }
  0xf7   : > { %3953 = dma.done.wait (%p4864_p0), [#allocation13], 32   ;;  %p4865_p5 = pmov %p4864_p0 }
  0xf8   : > { %p4866_p1 = pmov %p4864_p0 }
  0xf9   : > { %3955 = vsyncadd (%p4865_p5), [#allocation13], 4294967264 }
  0xfa   : > { %3957 = dma.done.wait (%p4866_p1), [#allocation16], 528   ;;  %p4867_p3 = pmov %p4864_p0 }
  0xfb   : > { %p4868_p4 = pmov %p4864_p0 }
  0xfc   : > { %3959 = vsyncadd (%p4867_p3), [#allocation16], 4294966768 }
  0xfd   : > { %3961 = dma.done.wait (%p4868_p4), [#allocation19], 528   ;;  %p4869_p8 = pmov %p4864_p0 }
  0xfe   : > { %p4870_p11 = pmov %p4864_p0 }
  0xff   : > { %3963 = vsyncadd (%p4869_p8), [#allocation19], 4294966768 }
 0x100   : > { %3965 = dma.done.wait (%p4870_p11), [#allocation22], 80   ;;  %p4871_p12 = pmov %p4864_p0 }
 0x101   : > { %p4872_p13 = pmov %p4864_p0 }
 0x102   : > { %3967 = vsyncadd (%p4871_p12), [#allocation22], 4294967216 }
 0x103   : > { %3969 = dma.done.wait (%p4872_p13), [#allocation25], 512   ;;  %p4873_p6 = pmov %p4864_p0 }
 0x104   : > { %vm1018_vm0 = vcmask 261120   ;;  %v4418_v0 = vld [vmem:[%s880_s21] sm:$0xff]  ;;  %s4874_s0 = sld [smem:[#allocation37_spill]]  ;;  %v4008_v8 = vmov 0.0   ;;  %vm4009_vm1 = vmmov 0   ;;  %vm1125_vm2 = vcmask 523264  }
 0x105   : > { %3971 = vsyncadd (%p4873_p6), [#allocation25], 4294966784  ;;  %v1019_v1 = vsel %vm1018_vm0, %v4418_v0, 0.0  ;;  %3126 = vmatprep.subr.mxu0 %v4008_v8  ;;  %3134 = vmatprep.mubr.msk.f32.mxu0 %vm4009_vm1, %v4008_v8  ;;  %s4875_s3 = sld [smem:[#allocation39_spill]]  ;;  %v3002_v25 = vld [vmem:[#allocation6] ss:$0 sm:$0xff] }
 0x106   : > { %1020 = vadd.xlane.f32.xlu0 %v1019_v1  ;;  %3137 = vmatprep.subr.mxu1 %v4008_v8  ;;  %v3005_v34 = vld [vmem:[#allocation8] ss:$0 sm:$0xff]  ;;  %s4876_s27 = sld [smem:[#allocation41_spill]]  ;;  %vm1459_vm3 = vcmask 64512   ;;  %s4010_s29 = smov 120   ;;  %vm1791_vm4 = vcmask 130112  }
 0x107   : > { %3153 = vmatprep.mubr.msk.f32.mxu1 %vm4009_vm1, %v4008_v8  ;;  %s4877_s10 = sld [smem:[#allocation45_spill]]  ;;  %s4011_s6 = smov 112   ;;  %vm1962_vm5 = vcmask 195712   ;;  %vm2133_vm6 = vcmask 261312  }
 0x108   : > { %s4878_s18 = sld [smem:[#allocation43_spill]]  ;;  %s4012_s12 = smov 104  }
 0x109   : > { %s4879_s15 = sld [smem:[#allocation47_spill]]  ;;  %s4013_s21 = smov 8  }
 0x10a   : > { %v1007_v7 = vld [vmem:[%s4874_s0 + $0x18] sm:$0xff]  ;;  %v1006_v9 = vld [vmem:[%s4874_s0 + $0x10] sm:$0xff]  ;;  %v1005_v10 = vld [vmem:[%s4874_s0 + $0x8] sm:$0xff]  ;;  %s4014_s14 = smov 16   ;;  %s4015_s13 = smov 24  }
 0x10b   : > { %3127 = vmatpush3.msra.mxu0 %v1007_v7  ;;  %v1004_v11 = vld [vmem:[%s4874_s0] sm:$0xff]  ;;  %v1016_v17 = vld [vmem:[%s4875_s3 + $0x38] sm:$0xff]  ;;  %v1015_v18 = vld [vmem:[%s4875_s3 + $0x30] sm:$0xff]  ;;  %s4880_s11 = sld [smem:[#allocation56_spill]]  ;;  %p4883_p10 = scmp.ne.s32.totalorder %s4854_s25, 0 }
 0x10c   : > { %3128 = vmatprep.subr.mxu0 %v4008_v8  ;;  %3138 = vmatpush3.msra.mxu1 %v1016_v17  ;;  %v1014_v19 = vld [vmem:[%s4875_s3 + $0x28] sm:$0xff]  ;;  %v1013_v20 = vld [vmem:[%s4875_s3 + $0x20] sm:$0xff]  ;;  %v1012_v21 = vld [vmem:[%s4875_s3 + $0x18] sm:$0xff] }
 0x10d   : > { %3129 = vmatpush3.msra.mxu0 %v1006_v9  ;;  %3139 = vmatprep.subr.mxu1 %v4008_v8  ;;  %v1011_v22 = vld [vmem:[%s4875_s3 + $0x10] sm:$0xff]  ;;  %v1010_v23 = vld [vmem:[%s4875_s3 + $0x8] sm:$0xff]  ;;  %v1009_v24 = vld [vmem:[%s4875_s3] sm:$0xff] }
 0x10e   : > { %3130 = vmatprep.subr.mxu0 %v4008_v8  ;;  %3140 = vmatpush3.msra.mxu1 %v1015_v18  ;;  %v1216_v45 = vld [vmem:[%s4876_s27 + $0x18] sm:$0xff]  ;;  %v1215_v47 = vld [vmem:[%s4876_s27 + $0x10] sm:$0xff]  ;;  %v1214_v49 = vld [vmem:[%s4876_s27 + $0x8] sm:$0xff] }
 0x10f   : > { %3131 = vmatpush3.msra.mxu0 %v1005_v10  ;;  %3141 = vmatprep.subr.mxu1 %v4008_v8  ;;  %v1381_v46 = vld [vmem:[%s4877_s10 + $0x18] sm:$0xff]  ;;  %v1380_v48 = vld [vmem:[%s4877_s10 + $0x10] sm:$0xff]  ;;  %v1379_v50 = vld [vmem:[%s4877_s10 + $0x8] sm:$0xff] }
 0x110   : > { %3132 = vmatprep.subr.mxu0 %v4008_v8  ;;  %3142 = vmatpush3.msra.mxu1 %v1014_v19  ;;  %v1213_v51 = vld [vmem:[%s4876_s27] sm:$0xff]  ;;  %v1300_v58 = vld [vmem:[%s4878_s18 + $0x18] sm:$0xff]  ;;  %v1299_v59 = vld [vmem:[%s4878_s18 + $0x10] sm:$0xff] }
 0x111   : > { %3133 = vmatpush3.msra.mxu0 %v1004_v11  ;;  %3143 = vmatprep.subr.mxu1 %v4008_v8  ;;  %v1378_v52 = vld [vmem:[%s4877_s10] sm:$0xff]  ;;  %v1298_v60 = vld [vmem:[%s4878_s18 + $0x8] sm:$0xff]  ;;  %s4882_s10 = sld [smem:[#allocation58_spill]] }
 0x112   : > { %3156 = vmatprep.subr.mxu0 %v4008_v8  ;;  %3144 = vmatpush3.msra.mxu1 %v1013_v20  ;;  %v1297_v61 = vld [vmem:[%s4878_s18] sm:$0xff] }
 0x113   : > { %3145 = vmatprep.subr.mxu1 %v4008_v8 }
 0x114   : > { %3146 = vmatpush3.msra.mxu1 %v1012_v21 }
 0x115   : > { %3147 = vmatprep.subr.mxu1 %v4008_v8 }
 0x116   : > { %3148 = vmatpush3.msra.mxu1 %v1011_v22 }
 0x117   : > { %3149 = vmatprep.subr.mxu1 %v4008_v8 }
 0x118   : > { %3150 = vmatpush3.msra.mxu1 %v1010_v23 }
 0x119   : > { %3151 = vmatprep.subr.mxu1 %v4008_v8 }
 0x11a   : > { %3152 = vmatpush3.msra.mxu1 %v1009_v24 }
 0x11b   : > { %3178 = vmatprep.subr.mxu1 %v4008_v8 }
 0x18f   : > { %v1021_v2 = vpop.xlane.xlu0 %1020 }
 0x190   : > { %v1023_v3 = vmul.f32 0.03125, %v1021_v2  ;;  %v3009_v2 = vld [vmem:[#allocation11] ss:$0 sm:$0xff] }
 0x192   : > { %v1024_v4 = vsub.f32 %v4418_v0, %v1023_v3 }
 0x194   : > { %v1025_v5 = vmul.f32 %v1024_v4, %v1024_v4 }
 0x196   : > { %v1026_v6 = vsel %vm1018_vm0, %v1025_v5, 0.0 }
 0x197   : > { %1027 = vadd.xlane.f32.xlu0 %v1026_v6  ;;  %v3011_v6 = vld [vmem:[#allocation12] ss:$0 sm:$0xff] }
 0x220   : > { %v1028_v12 = vpop.xlane.xlu0 %1027 }
 0x221   : > { %v1029_v13 = vmul.f32 0.03125, %v1028_v12 }
 0x223   : > { %v1030_v14 = vadd.f32 1e-05, %v1029_v13 }
 0x225   : > { %3490 = vrsqrt.f32 %v1030_v14 }
 0x232   : > { %v3491_v15 = vpop.eup %3490 }
 0x233   : > { %v1032_v16 = vmul.f32 %v3491_v15, %v1024_v4  ;;  %v3007_v4 = vld [vmem:[#allocation9] ss:$0 sm:$0xff] }
 0x235   : > { %3135 = vmatmul.mubr.msk.f32.vlgmr.msra.gmra.mxu0 %vm1018_vm0, %v1032_v16 }
 0x236   : > { %3164 = vmatprep.mubr.msk.f32.mxu0 %vm4009_vm1, %v4008_v8  ;;  %3157 = vmatpush3.msra.mxu0 %v1216_v45 }
 0x237   : > { %3158 = vmatprep.subr.mxu0 %v4008_v8 }
 0x238   : > { %3159 = vmatpush3.msra.mxu0 %v1215_v47 }
 0x239   : > { %3160 = vmatprep.subr.mxu0 %v4008_v8 }
 0x23a   : > { %3161 = vmatpush3.msra.mxu0 %v1214_v49 }
 0x23b   : > { %3162 = vmatprep.subr.mxu0 %v4008_v8 }
 0x23c   : > { %3163 = vmatpush3.msra.mxu0 %v1213_v51 }
 0x23d   : > { %3167 = vmatprep.subr.mxu0 %v4008_v8 }
 0x2f5   : > { %v1108_v26 = vpop.f32.mrf.mxu0 }
 0x2f6   : > { %v1109_v27 = vadd.f32 %v3002_v25, %v1108_v26 }
 0x2f7   : > { %v3136_v28 = vpop.f32.mrf.mxu0 }
 0x2f8   : > { %v3004_v29 = vmul.f32 -1.442695, %v1109_v27 }
 0x2fa   : > { %3492 = vpow2.f32 %v3004_v29 }
 0x307   : > { %v3493_v30 = vpop.eup %3492 }
 0x308   : > { %v1115_v31 = vadd.f32 1.0, %v3493_v30 }
 0x30a   : > { %3494 = vrcp.f32 %v1115_v31 }
 0x317   : > { %v3495_v32 = vpop.eup %3494 }
 0x318   : > { %v1118_v33 = vmul.f32 %v3495_v32, %v1109_v27 }
 0x31a   : > { %3154 = vmatmul.mubr.msk.f32.vlgmr.msra.gmra.mxu1 %vm1125_vm2, %v1118_v33 }
 0x31b   : > { %3186 = vmatprep.mubr.msk.f32.mxu1 %vm4009_vm1, %v4008_v8  ;;  %3179 = vmatpush3.msra.mxu1 %v1381_v46 }
 0x31c   : > { %3180 = vmatprep.subr.mxu1 %v4008_v8 }
 0x31d   : > { %3181 = vmatpush3.msra.mxu1 %v1380_v48 }
 0x31e   : > { %3182 = vmatprep.subr.mxu1 %v4008_v8 }
 0x31f   : > { %3183 = vmatpush3.msra.mxu1 %v1379_v50 }
 0x320   : > { %3184 = vmatprep.subr.mxu1 %v4008_v8 }
 0x321   : > { %3185 = vmatpush3.msra.mxu1 %v1378_v52 }
 0x322   : > { %3204 = vmatprep.subr.mxu1 %v4008_v8 }
 0x3da   : > { %v1195_v35 = vpop.f32.mrf.mxu1 }
 0x3db   : > { %v1196_v36 = vadd.f32 %v3005_v34, %v1195_v35 }
 0x3dc   : > { %v3155_v37 = vpop.f32.mrf.mxu1 }
 0x3dd   : > { %v4485_v38 = vadd.f32 %v1196_v36, %v4418_v0 }
 0x3df   : > { %v1200_v39 = vsel %vm1018_vm0, %v4485_v38, 0.0 }
 0x3e0   : > { %1201 = vadd.xlane.f32.xlu1 %v1200_v39 }
 0x469   : > { %v1202_v40 = vpop.xlane.xlu1 %1201 }
 0x46a   : > { %v1203_v41 = vmul.f32 0.03125, %v1202_v40 }
 0x46c   : > { %v1204_v42 = vsub.f32 %v4485_v38, %v1203_v41 }
 0x46e   : > { %v1205_v43 = vmul.f32 %v1204_v42, %v1204_v42 }
 0x470   : > { %v1206_v44 = vsel %vm1018_vm0, %v1205_v43, 0.0 }
 0x471   : > { %1207 = vadd.xlane.f32.xlu1 %v1206_v44 }
 0x4fa   : > { %v1208_v53 = vpop.xlane.xlu1 %1207 }
 0x4fb   : > { %v1209_v54 = vmul.f32 0.03125, %v1208_v53 }
 0x4fd   : > { %v1210_v55 = vadd.f32 1e-05, %v1209_v54 }
 0x4ff   : > { %3496 = vrsqrt.f32 %v1210_v55 }
 0x50c   : > { %v3497_v56 = vpop.eup %3496 }
 0x50d   : > { %v1212_v57 = vmul.f32 %v3497_v56, %v1204_v42 }
 0x50f   : > { %3165 = vmatmul.mubr.msk.f32.vlgmr.msra.gmra.mxu0 %vm1018_vm0, %v1212_v57  ;;  %3187 = vmatmul.mubr.msk.f32.vlgmr.msra.gmra.mxu1 %vm1018_vm0, %v1212_v57 }
 0x510   : > { %3168 = vmatpush3.msra.mxu0 %v1300_v58  ;;  %3175 = vmatprep.mubr.msk.f32.mxu0 %vm4009_vm1, %v4008_v8 }
 0x511   : > { %3169 = vmatprep.subr.mxu0 %v4008_v8  ;;  %3206 = vmatprep.mubr.msk.f32.mxu1 %vm4009_vm1, %v4008_v8 }
 0x512   : > { %3170 = vmatpush3.msra.mxu0 %v1299_v59 }
 0x513   : > { %3171 = vmatprep.subr.mxu0 %v4008_v8 }
 0x514   : > { %3172 = vmatpush3.msra.mxu0 %v1298_v60 }
 0x515   : > { %3173 = vmatprep.subr.mxu0 %v4008_v8 }
 0x516   : > { %3174 = vmatpush3.msra.mxu0 %v1297_v61  ;;  %v2139_v61 = vld [vmem:[%s4879_s15 + $0x18] sm:$0xff] }
 0x517   : > { %3176 = vmatmul.mubr.msk.f32.vlgmr.msra.gmra.mxu0 %vm1018_vm0, %v1212_v57  ;;  %3189 = vmatprep.subr.mxu0 %v4008_v8 }
 0x518   : > { %3191 = vmatprep.mubr.msk.f32.mxu0 %vm4009_vm1, %v4008_v8 }
 0x5cf   : > { %v1293_v62 = vpop.f32.mrf.mxu0  ;;  %v1455_v63 = vpop.f32.mrf.mxu1 }
 0x5d0   : > { %v1294_v9 = vadd.f32 %v3007_v4, %v1293_v62  ;;  %v1456_v10 = vadd.f32 %v3011_v6, %v1455_v63  ;;  %v2138_v62 = vld [vmem:[%s4879_s15 + $0x10] sm:$0xff]  ;;  %v2136_v4 = vld [vmem:[%s4879_s15] sm:$0xff] }
 0x5d1   : > { %v3166_v0 = vpop.f32.mrf.mxu0  ;;  %v3188_v1 = vpop.f32.mrf.mxu1 }
 0x5d2   : > { %v2137_v1 = vld [vmem:[%s4879_s15 + $0x8] sm:$0xff] }
 0x5d7   : > { %v1374_v3 = vpop.f32.mrf.mxu0 }
 0x5d8   : > { %v1375_v5 = vadd.f32 %v3009_v2, %v1374_v3 }
 0x5d9   : > { %v3177_v7 = vpop.f32.mrf.mxu0 }
 0x5da   : > { %1623 = vrot.lane.b32.xlu1 %v1375_v5, %s4010_s29  ;;  %3190 = vmatpush3.xpose.msk.msra.mxu0 %vm1459_vm3, %v1375_v5 }
 0x5db   : > { %3194 = vmatprep.subr.mxu0 %v4008_v8 }
 0x5dd   : > { %3192 = vmatmul.mubr.msk.f32.vlgmr.msra.gmra.mxu0 %vm1459_vm3, %v1294_v9 }
 0x5de   : > { %1795 = vrot.lane.b32.xlu1 %v1375_v5, %s4011_s6  ;;  %3195 = vmatpush3.msra.mxu0 %v1456_v10 }
 0x5df   : > { %3196 = vmatprep.mubr.msk.f32.mxu0 %vm4009_vm1, %v4008_v8  ;;  %3199 = vmatprep.subr.mxu0 %v4008_v8 }
 0x5e2   : > { %1793 = vrot.lane.b32.xlu1 %v1294_v9, %s4011_s6 }
 0x5e6   : > { %1966 = vrot.lane.b32.xlu1 %v1375_v5, %s4012_s12 }
 0x64c   : > { %v1624_v17 = vpop.permute.xlu1 %1623 }
 0x650   : > { %v1796_v18 = vpop.permute.xlu1 %1795 }
 0x654   : > { %v1794_v20 = vpop.permute.xlu1 %1793 }
 0x658   : > { %v1967_v22 = vpop.permute.xlu1 %1966 }
 0x69d   : > { %v1532_v11 = vpop.f32.mrf.mxu0 }
 0x69e   : > { %v1536_v12 = vsel %vm1459_vm3, %v1532_v11, -inf }
 0x69f   : > { %1537 = vmax.xlane.f32.xlu0 %v1536_v12  ;;  %v3193_v13 = vpop.f32.mrf.mxu0 }
 0x6b5   : > { %1621 = vrot.lane.b32.xlu0 %v1294_v9, %s4010_s29 }
 0x6b9   : > { %1964 = vrot.lane.b32.xlu0 %v1294_v9, %s4012_s12 }
 0x728   : > { %v1538_v14 = vpop.xlane.xlu0 %1537 }
 0x729   : > { %v1539_v15 = vsub.f32 %v1532_v11, %v1538_v14 }
 0x72b   : > { %v1540_v16 = vmul.f32 1.442695, %v1539_v15 }
 0x72c   : > { %v1622_v21 = vpop.permute.xlu0 %1621 }
 0x72d   : > { %3498 = vpow2.f32 %v1540_v16 }
 0x730   : > { %v1965_v23 = vpop.permute.xlu0 %1964 }
 0x73a   : > { %v4561_v19 = vpop.eup %3498 }
 0x73b   : > { %3197 = vmatmul.mubr.msk.f32.vlgmr.msra.gmra.mxu0 %vm1459_vm3, %v4561_v19  ;;  %v1542_v54 = vsel %vm1459_vm3, %v4561_v19, 0.0 }
 0x73c   : > { %3200 = vmatpush3.xpose.msk.msra.mxu0 %vm1459_vm3, %v1624_v17  ;;  %3201 = vmatprep.mubr.msk.f32.mxu0 %vm4009_vm1, %v4008_v8 }
 0x73d   : > { %3209 = vmatprep.subr.mxu0 %v4008_v8 }
 0x73f   : > { %3202 = vmatmul.mubr.msk.f32.vlgmr.msra.gmra.mxu0 %vm1459_vm3, %v1622_v21 }
 0x740   : > { %3210 = vmatpush3.xpose.msk.msra.mxu0 %vm1459_vm3, %v1796_v18  ;;  %3211 = vmatprep.mubr.msk.f32.mxu0 %vm4009_vm1, %v4008_v8  ;;  %v3025_v18 = vld [vmem:[#allocation14] ss:$0 sm:$0xff] }
 0x741   : > { %3219 = vmatprep.subr.mxu0 %v4008_v8 }
 0x743   : > { %3212 = vmatmul.mubr.msk.f32.vlgmr.msra.gmra.mxu0 %vm1459_vm3, %v1794_v20 }
 0x744   : > { %3220 = vmatpush3.xpose.msk.msra.mxu0 %vm1459_vm3, %v1967_v22  ;;  %3221 = vmatprep.mubr.msk.f32.mxu0 %vm4009_vm1, %v4008_v8 }
 0x745   : > { %3229 = vmatprep.subr.mxu0 %v4008_v8 }
 0x747   : > { %3222 = vmatmul.mubr.msk.f32.vlgmr.msra.gmra.mxu0 %vm1459_vm3, %v1965_v23 }
 0x748   : > { %3237 = vmatprep.mubr.msk.f32.mxu0 %vm4009_vm1, %v4008_v8  ;;  %3230 = vmatpush3.msra.mxu0 %v2139_v61  ;;  %v2406_v61 = vld [vmem:[#allocation21] sm:$0x7] }
 0x749   : > { %3231 = vmatprep.subr.mxu0 %v4008_v8 }
 0x74a   : > { %3232 = vmatpush3.msra.mxu0 %v2138_v62 }
 0x74b   : > { %3233 = vmatprep.subr.mxu0 %v4008_v8 }
 0x74c   : > { %3234 = vmatpush3.msra.mxu0 %v2137_v1 }
 0x74d   : > { %3235 = vmatprep.subr.mxu0 %v4008_v8 }
 0x74e   : > { %3236 = vmatpush3.msra.mxu0 %v2136_v4 }
 0x74f   : > { %3251 = vmatprep.subr.mxu0 %v4008_v8 }
 0x7fb   : > { %v1615_v24 = vpop.f32.mrf.mxu0 }
 0x7fd   : > { %v3198_v25 = vpop.f32.mrf.mxu0 }
 0x7ff   : > { %v1695_v26 = vpop.f32.mrf.mxu0 }
 0x800   : > { %v1699_v27 = vsel %vm1459_vm3, %v1695_v26, -inf }
 0x801   : > { %1700 = vmax.xlane.f32.xlu1 %v1699_v27  ;;  %v3203_v28 = vpop.f32.mrf.mxu0 }
 0x803   : > { %v1867_v29 = vpop.f32.mrf.mxu0 }
 0x804   : > { %v1871_v30 = vsel %vm1459_vm3, %v1867_v29, -inf }
 0x805   : > { %1872 = vmax.xlane.f32.xlu0 %v1871_v30  ;;  %v3213_v31 = vpop.f32.mrf.mxu0  ;;  %v2321_v30 = vld [vmem:[#allocation18 + $0x18] sm:$0xff] }
 0x806   : > { %v2236_v31 = vld [vmem:[#allocation15 + $0x10] sm:$0xff] }
 0x807   : > { %v2038_v32 = vpop.f32.mrf.mxu0 }
 0x808   : > { %v2042_v33 = vsel %vm1459_vm3, %v2038_v32, -inf }
 0x809   : > { %2043 = vmax.xlane.f32.xlu0 %v2042_v33  ;;  %v3223_v34 = vpop.f32.mrf.mxu0  ;;  %v2319_v33 = vld [vmem:[#allocation18 + $0x8] sm:$0xff] }
 0x80a   : > { %v2234_v34 = vld [vmem:[#allocation15] sm:$0xff] }
 0x812   : > { %1881 = vrot.lane.b32.xlu1 %v1456_v10, %s4011_s6  ;;  %s4881_s6 = sld [smem:[#allocation57_spill]] }
 0x816   : > { %2052 = vrot.lane.b32.xlu1 %v1456_v10, %s4012_s12  ;;  %s3044_s12 = sshll.u32 %s4178_s28, 7 }
 0x817   : > { %s2772_s15 = scalar_lea.hbm %s4882_s10, %s3044_s12 }
 0x81f   : > { %1710 = vrot.lane.b32.xlu0 %v1456_v10, %s4010_s29 }
 0x88a   : > { %v1701_v35 = vpop.xlane.xlu1 %1700 }
 0x88b   : > { %v1702_v36 = vsub.f32 %v1695_v26, %v1701_v35  ;;  %v2318_v35 = vld [vmem:[#allocation18] sm:$0xff] }
 0x88d   : > { %v1703_v37 = vmul.f32 1.442695, %v1702_v36 }
 0x88e   : > { %v1873_v39 = vpop.xlane.xlu0 %1872  ;;  %v1882_v46 = vpop.permute.xlu1 %1881 }
 0x88f   : > { %3500 = vpow2.f32 %v1703_v37  ;;  %v1874_v40 = vsub.f32 %v1867_v29, %v1873_v39  ;;  %v2237_v29 = vld [vmem:[#allocation15 + $0x18] sm:$0xff] }
 0x891   : > { %v1875_v41 = vmul.f32 1.442695, %v1874_v40 }
 0x892   : > { %v2044_v42 = vpop.xlane.xlu0 %2043  ;;  %v2053_v50 = vpop.permute.xlu1 %2052 }
 0x893   : > { %3502 = vpow2.f32 %v1875_v41  ;;  %v2045_v43 = vsub.f32 %v2038_v32, %v2044_v42  ;;  %v2320_v32 = vld [vmem:[#allocation18 + $0x10] sm:$0xff] }
 0x894   : > { %v2455_v42 = vld [vmem:[%s4783_s19 + $0x18] sm:$0xff] }
 0x895   : > { %v2046_v44 = vmul.f32 1.442695, %v2045_v43  ;;  %v2454_v43 = vld [vmem:[%s4783_s19 + $0x10] sm:$0xff] }
 0x896   : > { %v1711_v45 = vpop.permute.xlu0 %1710 }
 0x897   : > { %3504 = vpow2.f32 %v2046_v44  ;;  %3205 = vmatpush3.msra.mxu1 %v1711_v45  ;;  %v2453_v44 = vld [vmem:[%s4783_s19 + $0x8] sm:$0xff]  ;;  %v2452_v45 = vld [vmem:[%s4783_s19] sm:$0xff] }
 0x898   : > { %3214 = vmatprep.subr.mxu1 %v4008_v8 }
 0x89c   : > { %v3501_v47 = vpop.eup %3500 }
 0x89d   : > { %3207 = vmatmul.mubr.msk.f32.vlgmr.msra.gmra.mxu1 %vm1459_vm3, %v3501_v47  ;;  %v1705_v48 = vsel %vm1459_vm3, %v3501_v47, 0.0 }
 0x89e   : > { %3215 = vmatpush3.msra.mxu1 %v1882_v46  ;;  %1706 = vadd.xlane.f32.xlu1 %v1705_v48  ;;  %v3029_v46 = vld [vmem:[#allocation20] ss:$0 sm:$0xff] }
 0x89f   : > { %3216 = vmatprep.mubr.msk.f32.mxu1 %vm4009_vm1, %v4008_v8  ;;  %3224 = vmatprep.subr.mxu1 %v4008_v8 }
 0x8a0   : > { %v3503_v49 = vpop.eup %3502 }
 0x8a1   : > { %3217 = vmatmul.mubr.msk.f32.vlgmr.msra.gmra.mxu1 %vm1459_vm3, %v3503_v49  ;;  %v1877_v51 = vsel %vm1459_vm3, %v3503_v49, 0.0 }
 0x8a2   : > { %3225 = vmatpush3.msra.mxu1 %v2053_v50  ;;  %1878 = vadd.xlane.f32.xlu0 %v1877_v51 }
 0x8a3   : > { %3226 = vmatprep.mubr.msk.f32.mxu1 %vm4009_vm1, %v4008_v8  ;;  %3240 = vmatprep.subr.mxu1 %v4008_v8 }
 0x8a4   : > { %v3505_v52 = vpop.eup %3504 }
 0x8a5   : > { %3227 = vmatmul.mubr.msk.f32.vlgmr.msra.gmra.mxu1 %vm1459_vm3, %v3505_v52  ;;  %v2048_v53 = vsel %vm1459_vm3, %v3505_v52, 0.0 }
 0x8a6   : > { %2049 = vadd.xlane.f32.xlu0 %v2048_v53  ;;  %3248 = vmatprep.mubr.msk.f32.mxu1 %vm4009_vm1, %v4008_v8 }
 0x8a7   : > { %3241 = vmatpush3.msra.mxu1 %v2237_v29 }
 0x8a8   : > { %3242 = vmatprep.subr.mxu1 %v4008_v8 }
 0x8a9   : > { %3243 = vmatpush3.msra.mxu1 %v2236_v31 }
 0x8aa   : > { %1543 = vadd.xlane.f32.xlu0 %v1542_v54  ;;  %3244 = vmatprep.subr.mxu1 %v4008_v8 }
 0x927   : > { %v1707_v60 = vpop.xlane.xlu1 %1706 }
 0x92b   : > { %v1879_v55 = vpop.xlane.xlu0 %1878 }
 0x92f   : > { %v2050_v56 = vpop.xlane.xlu0 %2049 }
 0x933   : > { %v1544_v57 = vpop.xlane.xlu0 %1543 }
 0x934   : > { %3506 = vrcp.f32 %v1544_v57  ;;  %v3027_v57 = vld [vmem:[#allocation17] ss:$0 sm:$0xff] }
 0x935   : > { %3508 = vrcp.f32 %v1707_v60 }
 0x936   : > { %3510 = vrcp.f32 %v1879_v55  ;;  %v2407_v55 = vlaneseq }
 0x937   : > { %3512 = vrcp.f32 %v2050_v56 }
 0x938   : > { %v2408_v56 = vshrl.u32 %v2407_v55, 7 }
 0x93a   : > { %vm2410_vm7 = vcmp.ge.s32.totalorder %v2408_v56, 1  ;;  %vm2427_vm8 = vcmp.lt.s32.totalorder %v2408_v56, 7 }
 0x941   : > { %v3507_v58 = vpop.eup %3506 }
 0x942   : > { %v1619_v59 = vmul.f32 %v3507_v58, %v1615_v24  ;;  %v3509_v63 = vpop.eup %3508  ;;  %v2416_v58 = vsub.s32 0, %v2408_v56 }
 0x943   : > { %v3511_v5 = vpop.eup %3510 }
 0x944   : > { %1620 = vst.msk [vmem:[#allocation2] sm:$0xff] %vm1459_vm3, %v1619_v59  ;;  %v3513_v10 = vpop.eup %3512  ;;  %v2422_v59 = vsub.s32 1, %v2408_v56  ;;  %v2417_v1 = vrot.slane %v2406_v61, %v2416_v58 }
 0x95d   : > { %v1782_v0 = vpop.f32.mrf.mxu1 }
 0x95e   : > { %v1786_v2 = vmul.f32 %v3509_v63, %v1782_v0  ;;  %v2433_v63 = vsub.s32 2, %v2408_v56 }
 0x95f   : > { %v3208_v3 = vpop.f32.mrf.mxu1 }
 0x960   : > { %1788 = vrot.lane.b32.xlu1 %v1786_v2, %s4013_s21  ;;  %v2423_v2 = vrot.slane %v2406_v61, %v2422_v59  ;;  %s1002_s21 = scalar_lea.vmem [#allocation26], %s2987_s17 }
 0x961   : > { %v1953_v6 = vpop.f32.mrf.mxu1  ;;  %s2774_s0 = sshll.u32 %s1002_s21, 4  ;;  %s2775_s0 = int_to_ptr.vmem [resolvable:$true] %s2774_s0 }
 0x962   : > { %v1957_v7 = vmul.f32 %v3511_v5, %v1953_v6  ;;  %v2434_v5 = vrot.slane %v2406_v61, %v2433_v63 }
 0x963   : > { %v3218_v9 = vpop.f32.mrf.mxu1 }
 0x964   : > { %1959 = vrot.lane.b32.xlu0 %v1957_v7, %s4014_s14  ;;  %s2761_s14 = scalar_lea.sflag [#allocation5], %s4380_s16 }
 0x965   : > { %v2124_v11 = vpop.f32.mrf.mxu1 }
 0x966   : > { %v2128_v12 = vmul.f32 %v3513_v10, %v2124_v11 }
 0x967   : > { %v3228_v13 = vpop.f32.mrf.mxu1 }
 0x968   : > { %2130 = vrot.lane.b32.xlu1 %v2128_v12, %s4015_s13  ;;  %v3032_v13 = vld [vmem:[#allocation23] ss:$0 sm:$0xff]  ;;  %s3898_s13 = scalar_lea.vmem %s2775_s0, 128 }
 0x969   : > { %p3899_p2 = scmp.ne.s32.totalorder %s2775_s0, %s3898_s13 }
 0x96b   : > { %p3900_p9 = pnand %p3899_p2, %p4883_p10 }
 0x96d   : > { %p3901_p7 = pneg %p3900_p9 }
 0x9d2   : > { %v1789_v14 = vpop.permute.xlu1 %1788 }
 0x9d3   : > { %1792 = vst.msk [vmem:[#allocation2] sm:$0xff] %vm1791_vm4, %v1789_v14 }
 0x9d6   : > { %v1960_v15 = vpop.permute.xlu0 %1959 }
 0x9d7   : > { %1963 = vst.msk [vmem:[#allocation2] sm:$0xff] %vm1962_vm5, %v1960_v15 }
 0x9da   : > { %v2131_v16 = vpop.permute.xlu1 %2130 }
 0x9db   : > { %2134 = vst.msk [vmem:[#allocation2] sm:$0xff] %vm2133_vm6, %v2131_v16 }
 0x9e2   : > { %v2135_v17 = vld [vmem:[#allocation2] sm:$0xff] }
 0x9e3   : > { %3238 = vmatmul.mubr.msk.f32.vlgmr.msra.gmra.mxu0 %vm1018_vm0, %v2135_v17 }
 0x9e4   : > { %3259 = vmatprep.mubr.msk.f32.mxu0 %vm4009_vm1, %v4008_v8  ;;  %3252 = vmatpush3.msra.mxu0 %v2321_v30 }
 0x9e5   : > { %3253 = vmatprep.subr.mxu0 %v4008_v8 }
 0x9e6   : > { %3254 = vmatpush3.msra.mxu0 %v2320_v32 }
 0x9e7   : > { %3255 = vmatprep.subr.mxu0 %v4008_v8 }
 0x9e8   : > { %3256 = vmatpush3.msra.mxu0 %v2319_v33  ;;  %v2539_v33 = vld [vmem:[#allocation24 + $0x10] sm:$0xff] }
 0x9e9   : > { %3257 = vmatprep.subr.mxu0 %v4008_v8 }
 0x9ea   : > { %3258 = vmatpush3.msra.mxu0 %v2318_v35 }
 0x9eb   : > { %3273 = vmatprep.subr.mxu0 %v4008_v8 }
 0xaa3   : > { %v2216_v19 = vpop.f32.mrf.mxu0 }
 0xaa4   : > { %v2217_v20 = vadd.f32 %v3025_v18, %v2216_v19 }
 0xaa5   : > { %v3239_v21 = vpop.f32.mrf.mxu0 }
 0xaa6   : > { %v4626_v22 = vadd.f32 %v2217_v20, %v4485_v38  ;;  %v2235_v38 = vld [vmem:[#allocation15 + $0x8] sm:$0xff]  ;;  %v3034_v21 = vld [vmem:[%s4784_s20] ss:$0 sm:$0xff] }
 0xaa7   : > { %3245 = vmatpush3.msra.mxu1 %v2235_v38  ;;  %v2540_v38 = vld [vmem:[#allocation24 + $0x18] sm:$0xff] }
 0xaa8   : > { %v2221_v23 = vsel %vm1018_vm0, %v4626_v22, 0.0  ;;  %3246 = vmatprep.subr.mxu1 %v4008_v8 }
 0xaa9   : > { %2222 = vadd.xlane.f32.xlu1 %v2221_v23  ;;  %3247 = vmatpush3.msra.mxu1 %v2234_v34  ;;  %v2538_v34 = vld [vmem:[#allocation24 + $0x8] sm:$0xff] }
 0xaaa   : > { %3262 = vmatprep.subr.mxu1 %v4008_v8 }
 0xb32   : > { %v2223_v24 = vpop.xlane.xlu1 %2222 }
 0xb33   : > { %v2224_v25 = vmul.f32 0.03125, %v2223_v24 }
 0xb35   : > { %v2225_v26 = vsub.f32 %v4626_v22, %v2224_v25 }
 0xb37   : > { %v2226_v27 = vmul.f32 %v2225_v26, %v2225_v26 }
 0xb39   : > { %v2227_v28 = vsel %vm1018_vm0, %v2226_v27, 0.0 }
 0xb3a   : > { %2228 = vadd.xlane.f32.xlu0 %v2227_v28 }
 0xbc3   : > { %v2229_v36 = vpop.xlane.xlu0 %2228 }
 0xbc4   : > { %v2230_v37 = vmul.f32 0.03125, %v2229_v36 }
 0xbc6   : > { %v2231_v39 = vadd.f32 1e-05, %v2230_v37 }
 0xbc8   : > { %3514 = vrsqrt.f32 %v2231_v39 }
 0xbd5   : > { %v3515_v40 = vpop.eup %3514 }
 0xbd6   : > { %v2233_v41 = vmul.f32 %v3515_v40, %v2225_v26 }
 0xbd8   : > { %3249 = vmatmul.mubr.msk.f32.vlgmr.msra.gmra.mxu1 %vm1018_vm0, %v2233_v41  ;;  %3260 = vmatmul.mubr.msk.f32.vlgmr.msra.gmra.mxu0 %vm1018_vm0, %v2233_v41  ;;  %v2549_v41 = vld [vmem:[%s4787_s23 + $0x38] sm:$0xff] }
 0xbd9   : > { %3270 = vmatprep.mubr.msk.f32.mxu1 %vm4009_vm1, %v4008_v8  ;;  %3281 = vmatprep.mubr.msk.f32.mxu0 %vm4009_vm1, %v4008_v8 }
 0xbda   : > { %3263 = vmatpush3.msra.mxu1 %v2455_v42  ;;  %3274 = vmatpush3.msra.mxu0 %v2540_v38  ;;  %v2548_v42 = vld [vmem:[%s4787_s23 + $0x30] sm:$0xff] }
 0xbdb   : > { %3264 = vmatprep.subr.mxu1 %v4008_v8  ;;  %3275 = vmatprep.subr.mxu0 %v4008_v8 }
 0xbdc   : > { %3265 = vmatpush3.msra.mxu1 %v2454_v43  ;;  %3276 = vmatpush3.msra.mxu0 %v2539_v33  ;;  %v2547_v43 = vld [vmem:[%s4787_s23 + $0x28] sm:$0xff] }
 0xbdd   : > { %3266 = vmatprep.subr.mxu1 %v4008_v8  ;;  %3277 = vmatprep.subr.mxu0 %v4008_v8 }
 0xbde   : > { %3267 = vmatpush3.msra.mxu1 %v2453_v44  ;;  %3278 = vmatpush3.msra.mxu0 %v2538_v34  ;;  %v2546_v44 = vld [vmem:[%s4787_s23 + $0x20] sm:$0xff] }
 0xbdf   : > { %3268 = vmatprep.subr.mxu1 %v4008_v8  ;;  %3279 = vmatprep.subr.mxu0 %v4008_v8 }
 0xbe0   : > { %3269 = vmatpush3.msra.mxu1 %v2452_v45  ;;  %v2545_v45 = vld [vmem:[%s4787_s23 + $0x18] sm:$0xff] }
 0xbe1   : > { %3284 = vmatprep.subr.mxu1 %v4008_v8 }
 0xc98   : > { %v2314_v47 = vpop.f32.mrf.mxu1  ;;  %v2395_v48 = vpop.f32.mrf.mxu0 }
 0xc99   : > { %v2396_v49 = vadd.f32 %v3029_v46, %v2395_v48  ;;  %v2315_v60 = vadd.f32 %v3027_v57, %v2314_v47  ;;  %v2544_v46 = vld [vmem:[%s4787_s23 + $0x10] sm:$0xff]  ;;  %v2543_v47 = vld [vmem:[%s4787_s23 + $0x8] sm:$0xff]  ;;  %v2542_v48 = vld [vmem:[%s4787_s23] sm:$0xff] }
 0xc9a   : > { %v3250_v50 = vpop.f32.mrf.mxu1  ;;  %v3261_v51 = vpop.f32.mrf.mxu0 }
 0xc9b   : > { %v3031_v52 = vmul.f32 -1.442695, %v2396_v49  ;;  %v3036_v49 = vld [vmem:[%s4786_s22] ss:$0 sm:$0xff] }
 0xc9d   : > { %3516 = vpow2.f32 %v3031_v52 }
 0xcaa   : > { %v3517_v53 = vpop.eup %3516 }
 0xcab   : > { %v2402_v54 = vadd.f32 1.0, %v3517_v53 }
 0xcad   : > { %3518 = vrcp.f32 %v2402_v54 }
 0xcba   : > { %v3519_v62 = vpop.eup %3518 }
 0xcbb   : > { %v2405_v0 = vmul.f32 %v3519_v62, %v2315_v60 }
 0xcbd   : > { %v2409_v3 = vrot.slane %v2405_v0, 7  ;;  %v2426_v4 = vrot.slane %v2405_v0, 1  ;;  %v2424_v10 = vmul.f32 %v2423_v2, %v2405_v0 }
 0xcbf   : > { %v2413_v6 = vsel %vm2410_vm7, %v2409_v3, 0.0  ;;  %v2430_v7 = vsel %vm2427_vm8, %v2426_v4, 0.0 }
 0xcc0   : > { %v2418_v9 = vmul.f32 %v2417_v1, %v2413_v6  ;;  %v2435_v12 = vmul.f32 %v2434_v5, %v2430_v7 }
 0xcc2   : > { %v2425_v11 = vadd.f32 %v2424_v10, %v2418_v9  ;;  %v3041_v9 = vld [vmem:[%s4880_s11] ss:$0 sm:$0xff]  ;;  %s4016_s11 = smov [#allocation26]  }
 0xcc3   : > { %s3902_s28 = sshll.u32 %s4016_s11, 4  ;;  %s3903_s28 = int_to_ptr.vmem [resolvable:$false] %s3902_s28 }
 0xcc4   : > { %v2436_v14 = vadd.f32 %v2435_v12, %v2425_v11  ;;  %v3042_v11 = vld [vmem:[%s4881_s6] ss:$0 sm:$0xff]  ;;  %s3904_s17 = scalar_lea.vmem %s3903_s28, 256  ;;  %p3905_p0 = scmp.lt.s32.totalorder %s2775_s0, %s3903_s28 }
 0xcc5   : > { %p3906_p5 = scmp.lt.s32.totalorder %s3904_s17, %s3898_s13 }
 0xcc6   : > { %v2444_v15 = vadd.f32 %v3032_v13, %v2436_v14 }
 0xcc7   : > { %p3907_p1 = por %p3906_p5, %p3905_p0 }
 0xcc8   : > { %v3033_v16 = vmul.f32 -1.442695, %v2444_v15 }
 0xcc9   : > { %p3908_p3 = pnand %p3907_p1, %p3901_p7 }
 0xcca   : > { %3520 = vpow2.f32 %v3033_v16 }
 0xcd7   : > { %v3521_v17 = vpop.eup %3520 }
 0xcd8   : > { %v2448_v18 = vadd.f32 1.0, %v3521_v17 }
 0xcda   : > { %3522 = vrcp.f32 %v2448_v18 }
 0xce7   : > { %v3523_v19 = vpop.eup %3522 }
 0xce8   : > { %v2451_v20 = vmul.f32 %v3523_v19, %v2444_v15 }
 0xcea   : > { %3271 = vmatmul.mubr.msk.f32.vlgmr.msra.gmra.mxu1 %vm1018_vm0, %v2451_v20 }
 0xceb   : > { %3300 = vmatprep.mubr.msk.f32.mxu1 %vm4009_vm1, %v4008_v8  ;;  %3285 = vmatpush3.msra.mxu1 %v2549_v41 }
 0xcec   : > { %3286 = vmatprep.subr.mxu1 %v4008_v8 }
 0xced   : > { %3287 = vmatpush3.msra.mxu1 %v2548_v42 }
 0xcee   : > { %3288 = vmatprep.subr.mxu1 %v4008_v8 }
 0xcef   : > { %3289 = vmatpush3.msra.mxu1 %v2547_v43 }
 0xcf0   : > { %3290 = vmatprep.subr.mxu1 %v4008_v8 }
 0xcf1   : > { %3291 = vmatpush3.msra.mxu1 %v2546_v44 }
 0xcf2   : > { %3292 = vmatprep.subr.mxu1 %v4008_v8 }
 0xcf3   : > { %3293 = vmatpush3.msra.mxu1 %v2545_v45 }
 0xcf4   : > { %3294 = vmatprep.subr.mxu1 %v4008_v8 }
 0xcf5   : > { %3295 = vmatpush3.msra.mxu1 %v2544_v46 }
 0xcf6   : > { %3296 = vmatprep.subr.mxu1 %v4008_v8 }
 0xcf7   : > { %3297 = vmatpush3.msra.mxu1 %v2543_v47 }
 0xcf8   : > { %3298 = vmatprep.subr.mxu1 %v4008_v8  ;;  %v3039_v8 = vld [vmem:[%s4788_s24] ss:$0 sm:$0xff] }
 0xcf9   : > { %3299 = vmatpush3.msra.mxu1 %v2542_v48 }
 0xdaa   : > { %v2532_v23 = vpop.f32.mrf.mxu1 }
 0xdab   : > { %v2533_v24 = vadd.f32 %v3034_v21, %v2532_v23 }
 0xdac   : > { %v3272_v25 = vpop.f32.mrf.mxu1 }
 0xdad   : > { %v4669_v26 = vadd.f32 %v2533_v24, %v4626_v22  ;;  %v2537_v22 = vld [vmem:[#allocation24] sm:$0xff] }
 0xdae   : > { %3280 = vmatpush3.msra.mxu0 %v2537_v22 }
 0xdaf   : > { %v2551_v27 = vsel %vm1018_vm0, %v4669_v26, 0.0 }
 0xdb0   : > { %2552 = vadd.xlane.f32.xlu0 %v2551_v27 }
 0xe39   : > { %v2553_v28 = vpop.xlane.xlu0 %2552 }
 0xe3a   : > { %v2554_v29 = vmul.f32 0.03125, %v2553_v28 }
 0xe3c   : > { %v2555_v30 = vsub.f32 %v4669_v26, %v2554_v29 }
 0xe3e   : > { %v2556_v31 = vmul.f32 %v2555_v30, %v2555_v30 }
 0xe40   : > { %v2557_v32 = vsel %vm1018_vm0, %v2556_v31, 0.0 }
 0xe41   : > { %2558 = vadd.xlane.f32.xlu1 %v2557_v32 }
 0xeca   : > { %v2559_v35 = vpop.xlane.xlu1 %2558 }
 0xecb   : > { %v2560_v36 = vmul.f32 0.03125, %v2559_v35 }
 0xecd   : > { %v2561_v37 = vadd.f32 1e-05, %v2560_v36 }
 0xecf   : > { %3524 = vrsqrt.f32 %v2561_v37 }
 0xedc   : > { %v3525_v39 = vpop.eup %3524 }
 0xedd   : > { %v2563_v40 = vmul.f32 %v3525_v39, %v2555_v30 }
 0xedf   : > { %3282 = vmatmul.mubr.msk.f32.vlgmr.msra.gmra.mxu0 %vm1018_vm0, %v2563_v40 }
 0xf9f   : > { %v2639_v50 = vpop.f32.mrf.mxu0 }
 0xfa0   : > { %v2640_v51 = vadd.f32 %v3036_v49, %v2639_v50 }
 0xfa1   : > { %v3283_v52 = vpop.f32.mrf.mxu0 }
 0xfa2   : > { %v3038_v53 = vmul.f32 -1.442695, %v2640_v51 }
 0xfa4   : > { %3526 = vpow2.f32 %v3038_v53 }
 0xfb1   : > { %v3527_v54 = vpop.eup %3526 }
 0xfb2   : > { %v2646_v55 = vadd.f32 1.0, %v3527_v54 }
 0xfb4   : > { %3528 = vrcp.f32 %v2646_v55 }
 0xfc1   : > { %v3529_v56 = vpop.eup %3528 }
 0xfc2   : > { %v2649_v57 = vmul.f32 %v3529_v56, %v2640_v51 }
 0xfc4   : > { %3301 = vmatmul.mubr.msk.f32.vlgmr.msra.gmra.mxu1 %vm1125_vm2, %v2649_v57 }
0x1084   : > { %v2725_v58 = vpop.f32.mrf.mxu1 }
0x1085   : > { %v2726_v59 = vadd.f32 %v3039_v8, %v2725_v58 }
0x1086   : > { %v3302_v60 = vpop.f32.mrf.mxu1 }
0x1087   : > { %v2729_v61 = vadd.f32 %v2726_v59, %v4669_v26 }
0x1089   : > { %v2730_v62 = vsel %vm1018_vm0, %v2729_v61, 0.0 }
0x108a   : > { %2731 = vadd.xlane.f32.xlu0 %v2730_v62 }
0x1113   : > { %v2732_v63 = vpop.xlane.xlu0 %2731 }
0x1114   : > { %v2733_v0 = vmul.f32 0.03125, %v2732_v63 }
0x1116   : > { %v2734_v1 = vsub.f32 %v2729_v61, %v2733_v0 }
0x1118   : > { %v2735_v2 = vmul.f32 %v2734_v1, %v2734_v1 }
0x111a   : > { %v2736_v3 = vsel %vm1018_vm0, %v2735_v2, 0.0 }
0x111b   : > { %2737 = vadd.xlane.f32.xlu1 %v2736_v3 }
0x11a4   : > { %v2738_v4 = vpop.xlane.xlu1 %2737 }
0x11a5   : > { %v2739_v5 = vmul.f32 0.03125, %v2738_v4 }
0x11a7   : > { %v2740_v6 = vadd.f32 1e-05, %v2739_v5 }
0x11a9   : > { %3530 = vrsqrt.f32 %v2740_v6 }
0x11b6   : > { %v3531_v7 = vpop.eup %3530 }
0x11b7   : > { %v2742_v10 = vmul.f32 %v3531_v7, %v2734_v1 }
0x11b9   : > { %v2750_v12 = vmul.f32 %v3041_v9, %v2742_v10 }
0x11bb   : > { %v2758_v13 = vadd.f32 %v3042_v11, %v2750_v12 }
0x11bd   : > { %2759 = vst.msk [vmem:[%s1002_s21] sm:$0xff] %vm1018_vm0, %v2758_v13 }
0x11be   : > { %3911 = shalt.err (!%p3908_p3)
}
0x11bf   : > { %s3912_s1 = scalar_lea.hbm %s2772_s15, 128  ;;  %s3916_s5 = scalar_lea.hbm %s4882_s10, 256 }
0x11c0   : > { %p3913_p4 = scmp.ne.s32.totalorder %s2772_s15, %s3912_s1  ;;  %p3917_p12 = scmp.lt.s32.totalorder %s2772_s15, %s4882_s10 }
0x11c1   : > { %p3918_p13 = scmp.lt.s32.totalorder %s3916_s5, %s3912_s1 }
0x11c2   : > { %p3914_p8 = pnand %p3913_p4, %p4883_p10 }
0x11c3   : > { %p3919_p6 = por %p3918_p13, %p3917_p12 }
0x11c4   : > { %p3915_p11 = pneg %p3914_p8 }
0x11c6   : > { %p3920_p2 = pnand %p3919_p6, %p3915_p11 }
0x11c8   : > { %3923 = shalt.err (!%p3920_p2)
}
0x11c9   : > { %3357 = dma.vmem_to_hbm [thread:$0]  (%p4883_p10), %s2775_s0, 128, %s2772_s15, %s2761_s14  }
0x11ca PF: > { %s2786_s12 = sand.u32 1, %s3978_s7   ;;  %p4884_p9 = scmp.ne.s32.totalorder %s4855_s2, 0 }
0x11cb   : > { %p4885_p7 = scmp.ge.s32.totalorder %s3990_s30, 2  ;;  %s2787_s21 = scalar_lea.sflag [#allocation5], %s2786_s12 }
0x11cd   : > { %p3404_p0 = pnand %p4885_p7, %p4884_p9 }
0x11cf   : > { %p3405_p5 = pneg %p3404_p0 }
0x11d1   : > { %3973 = dma.done.wait (%p3405_p5), %s2787_s21, 128  }
0x11d2   : > { %3975 = vsyncadd (%p3405_p5), %s2787_s21, 4294967168  ;;  %p47_p1 = scmp.ge.s32.totalorder %s4323_s9, 4   ;;  %s4886_s7 = smov %s3982_s4 }
0x11d3   : > { %s4887_s4 = smov %s3986_s8  ;;  %s4888_s8 = smov %s4335_s26 }
0x11d4   : > { %s4889_s30 = smov %s4323_s9  ;;  %49 = sbr.rel (!%p47_p1) target bundleno = 36 (0x24), region = 225 }
0x11d9   :  { %2792 = vsyncpa [#allocation4], 1 }
0x11da   :  { %2794 = vsyncpa [#allocation4 + $0x1], 1 }
0x11db   :  { %2795 = vsyncpa [#allocation7], 1 }
0x11dc   :  { %2796 = vsyncpa [#allocation10], 1 }
0x11dd   :  { %2797 = vsyncpa [#allocation13], 1 }
0x11de   :  { %2798 = vsyncpa [#allocation16], 1 }
0x11df   :  { %2799 = vsyncpa [#allocation19], 1 }
0x11e0   :  { %2800 = vsyncpa [#allocation22], 1 }
0x11e1   :  { %2801 = vsyncpa [#allocation25], 1 }
0x11e2   :  { %2802 = vsyncpa [#allocation5], 1 }
0x11e3   :  { %2804 = vsyncpa [#allocation5 + $0x1], 1 }

</bundles_post_ra>
